<compile_context>
chip_gen: v7x
topology: tpu7x:2x2x1
jax: 0.10.0
libtpu: 0.0.40
codegen_flags: <defaults>
</compile_context>

<pallas_src>
import functools

import jax
import jax.numpy as jnp
from jax.experimental import pallas as pl
from jax.experimental.pallas import tpu as pltpu


def _round_up(x, m):
    return -(-x // m) * m


# ----------------------------- Pallas GRU kernel -----------------------------
def gru_chunk_kernel(gi_rz_ref, gi_n_ref, w_rz_ref, w_n_ref, b_hn_ref,
                     out_ref, h_ref, *, rows, g, hdim):
    """One grid step = rows*g GRU timesteps (PyTorch gate order r,z,n) on one batch block.

    gi_rz = x@W_i{r,z}^T + b_i{r,z} + b_h{r,z}  (r/z hidden biases folded in the wrapper)
    gi_n  = x@W_in^T + b_in                     (b_hn must stay in-kernel: it sits inside
                                                 the r*(...) term in PyTorch's GRU).
    """
    t = pl.program_id(1)

    # h0 is zeros in the reference module; reset at the first time chunk of each batch block.
    @pl.when(t == 0)
    def _():
        h_ref[...] = jnp.zeros_like(h_ref)

    bb = h_ref.shape[0]
    w_rz = w_rz_ref[...]                                      # (H, 2H) resident across the chunk
    w_n = w_n_ref[...]                                        # (H, H)
    b_hn = jnp.broadcast_to(b_hn_ref[...], (bb, hdim))        # hoisted (no per-iter broadcast)

    def row_body(row, h):
        # Static inner loop over the g lane positions of one packed output row:
        # lane offsets of loads/stores stay static; live ranges stay bounded (g <= 16).
        for j in range(g):
            t_idx = row * g + j
            gi_rz = gi_rz_ref[:, pl.ds(t_idx, 1), :][:, 0, :].astype(jnp.float32)  # (Bb, 2H)
            gi_n = gi_n_ref[:, pl.ds(t_idx, 1), :][:, 0, :].astype(jnp.float32)    # (Bb, H)

            # Per-gate matmuls keep every elementwise operand lane-0 aligned.
            gh_rz = jnp.dot(h, w_rz, preferred_element_type=jnp.float32)           # (Bb, 2H)
            gh_n = jnp.dot(h, w_n, preferred_element_type=jnp.float32) + b_hn      # (Bb, H)

            rz = jax.nn.sigmoid(gi_rz + gh_rz)   # fused r/z sigmoid: one EUP pass over 2H lanes
            r = rz[:, :hdim]                     # lane-0 aligned
            z = rz[:, hdim:]                     # offset slice: one XLU relayout (slot is free)
            n = jnp.tanh(gi_n + r * gh_n)
            h = n + z * (h - n)                  # == (1-z)*n + z*h

            # Packed (lane-folded) writeback: timestep row*g+j -> lanes [j*H,(j+1)*H) of `row`.
            out_ref[:, pl.ds(row, 1), j * hdim:(j + 1) * hdim] = (
                h.astype(out_ref.dtype)[:, None, :])
        return h

    h_ref[...] = jax.lax.fori_loop(0, rows, row_body, h_ref[...])


_TC_TARGET = 64   # soft target for timesteps folded into one grid step
_BB_CAP = 128     # max batch rows per block (MXU M dim)


def _tpu_hw_config():
    """Best-effort (vmem_capacity_bytes, num_tensorcores); conservative fallback."""
    vmem_bytes = 64 * 1024 * 1024     # safe for every generation (v7x has 64 MiB)
    num_cores = 1
    try:
        info = pltpu.get_tpu_info()
        cap = getattr(info, "vmem_capacity_bytes", None)
        if isinstance(cap, int) and cap > 0:
            vmem_bytes = cap
        for attr in ("num_cores", "num_tensorcores", "tensorcore_count", "core_count"):
            c = getattr(info, attr, None)
            if isinstance(c, int) and c > 0:
                num_cores = c
                break
    except Exception:
        pass
    if num_cores == 1:
        try:
            c = getattr(jax.devices()[0], "num_cores", None)
            if isinstance(c, int) and c > 0:
                num_cores = c
        except Exception:
            pass
    return vmem_bytes, num_cores


def gru_pallas(gi_rz, gi_n, w_rz, w_n, b_hn, *, vmem_bytes=64 << 20, num_cores=1):
    """gi_rz: (B,T,2H), gi_n: (B,T,H) precomputed input projections (+folded biases).

    Returns (B, T, H) float32 hidden states (PyTorch GRU `out`)."""
    B, T, H = gi_n.shape
    gi_bytes = jnp.dtype(gi_rz.dtype).itemsize

    # Lane-fold factor: pack G consecutive timesteps along lanes so packed output rows
    # are 128 lanes wide (dense HBM writeback rows) when H < 128.
    G = 128 // H if (H < 128 and 128 % H == 0) else 1

    # ---- batch blocking: wide M for the per-step MXU matmul; >=num_cores blocks if >1 TC ----
    B8 = _round_up(B, 8)
    nb_min = num_cores if (num_cores > 1 and B8 >= 8 * num_cores) else 1
    nb = max(nb_min, -(-B8 // _BB_CAP))
    Bb = _round_up(-(-B8 // nb), 8)
    B_pad = nb * Bb

    # ---- time chunking: minimize padded (dead) timesteps within the VMEM budget ----
    step = 8 * G
    if gi_bytes < 4:
        step = max(step, 16)                                  # sub-32-bit sublane packing
    per_step_bytes = 2 * Bb * (3 * H * gi_bytes + H * 4)      # double-buffered gi + packed out
    block_budget = int(0.4 * vmem_bytes)
    tc_budget = max(step, (block_budget // max(per_step_bytes, 1)) // step * step)
    tc_soft = max(step, (_TC_TARGET // step) * step)
    tc_cap = max(step, min(tc_budget, tc_soft))

    if T <= tc_cap:
        Tc = T_pad = _round_up(T, G)                          # single chunk (block == full dims)
    else:
        best = None
        for tc in range(step, tc_cap + 1, step):
            t_pad = _round_up(T, tc)
            key = (t_pad - T, -tc)                            # least padding, then largest chunk
            if best is None or key < best[0]:
                best = (key, tc, t_pad)
        Tc, T_pad = best[1], best[2]
    nt = T_pad // Tc

    if (B_pad, T_pad) != (B, T):
        pad = ((0, B_pad - B), (0, T_pad - T), (0, 0))
        gi_rz = jnp.pad(gi_rz, pad)
        gi_n = jnp.pad(gi_n, pad)

    footprint = (2 * Bb * Tc * 3 * H * gi_bytes               # gi blocks, double-buffered
                 + 2 * Bb * Tc * H * 4                        # packed out block, double-buffered
                 + 2 * (3 * H * H + H) * 4                    # weights + bias
                 + Bb * H * 4)                                # carried h scratch
    vmem_limit = int(min(0.9 * vmem_bytes, max(32 << 20, 2 * footprint + (4 << 20))))

    kernel = functools.partial(gru_chunk_kernel, rows=Tc // G, g=G, hdim=H)
    out_packed = pl.pallas_call(
        kernel,
        out_shape=jax.ShapeDtypeStruct((B_pad, T_pad // G, G * H), jnp.float32),
        grid=(nb, nt),
        in_specs=[
            pl.BlockSpec((Bb, Tc, 2 * H), lambda b, t: (b, t, 0)),   # gi_rz chunk
            pl.BlockSpec((Bb, Tc, H), lambda b, t: (b, t, 0)),       # gi_n chunk
            pl.BlockSpec((H, 2 * H), lambda b, t: (0, 0)),           # W_h{r,z}^T (resident)
            pl.BlockSpec((H, H), lambda b, t: (0, 0)),               # W_hn^T (resident)
            pl.BlockSpec((1, H), lambda b, t: (0, 0)),               # b_hn
        ],
        out_specs=pl.BlockSpec((Bb, Tc // G, G * H), lambda b, t: (b, t, 0)),
        scratch_shapes=[pltpu.VMEM((Bb, H), jnp.float32)],           # h carried across time chunks
        compiler_params=pltpu.CompilerParams(
            dimension_semantics=("parallel", "arbitrary"),
            vmem_limit_bytes=vmem_limit,
        ),
    )(gi_rz, gi_n, w_rz, w_n, b_hn)

    out = out_packed.reshape(B_pad, T_pad, H)                 # unpack lane-folded timesteps
    return out[:B, :T, :]


# ------------------------------ Module wrapper --------------------------------
class TextEncoderBottomPallas:
    """Synthetic-weight Embed -> Dropout(0) -> GRU part of vg.defn.encoders.TextEncoder."""

    def __init__(self, size_feature, size, size_embed=64, depth=1, size_attn=512,
                 dropout_p=0.0, gi_dtype=jnp.float32, key=None):
        assert depth == 1, "TODO(synk): only depth=1 GRU implemented (reference default)"
        assert dropout_p == 0.0  # Dropout(p=0.0) is the identity in forward.
        self.size_feature = size_feature
        self.size = size
        self.size_embed = size_embed
        self.size_attn = size_attn   # unused: attention head not implemented (see module TODO)
        self.gi_dtype = gi_dtype     # bf16 halves the gi HBM stream; f32 matches PyTorch exactly

        key = jax.random.PRNGKey(0) if key is None else key
        k_emb, k_wih, k_whh, k_bih, k_bhh = jax.random.split(key, 5)
        H, E, V = size, size_embed, size_feature
        bound = 1.0 / (H ** 0.5)

        # nn.Embedding: N(0, 1)
        self.embed = jax.random.normal(k_emb, (V, E), jnp.float32)
        # nn.GRU params: U(-1/sqrt(H), 1/sqrt(H)); stored pre-transposed for x @ W^T,
        # gate order (r, z, n) as in PyTorch.
        self.w_ih_t = jax.random.uniform(k_wih, (E, 3 * H), jnp.float32, -bound, bound)
        self.w_hh_t = jax.random.uniform(k_whh, (H, 3 * H), jnp.float32, -bound, bound)
        self.b_ih = jax.random.uniform(k_bih, (1, 3 * H), jnp.float32, -bound, bound)
        self.b_hh = jax.random.uniform(k_bhh, (1, 3 * H), jnp.float32, -bound, bound)

        # Per-gate split for the kernel (lane-0-aligned operands) + hidden-bias fold:
        # b_h{r,z} folds into the precomputed input projection; b_hn cannot (PyTorch
        # applies it inside the r*(...) term), so it is passed to the kernel.
        self.w_hh_rz = self.w_hh_t[:, :2 * H]
        self.w_hh_n = self.w_hh_t[:, 2 * H:]
        self.b_rz = self.b_ih[:, :2 * H] + self.b_hh[:, :2 * H]
        self.b_in = self.b_ih[:, 2 * H:]
        self.b_hn = self.b_hh[:, 2 * H:]

        # Hardware config queried once, outside jit (VMEM capacity, TensorCore count).
        self._vmem_bytes, self._num_cores = _tpu_hw_config()

    @functools.partial(jax.jit, static_argnums=0)
    def __call__(self, text):
        # text: (B, T) int32
        H = self.size
        emb = jnp.take(self.embed, text, axis=0)                          # (B, T, E) gather (glue)
        # Hoisted input projection: one big (B*T, E) x (E, 3H) matmul outside the recurrence.
        gi = jnp.einsum("bte,eg->btg", emb, self.w_ih_t,
                        preferred_element_type=jnp.float32)               # (B, T, 3H)
        gi_rz = (gi[..., :2 * H] + self.b_rz).astype(self.gi_dtype)       # b_ih + b_hh (r,z) folded
        gi_n = (gi[..., 2 * H:] + self.b_in).astype(self.gi_dtype)        # b_ih (n) folded
        return gru_pallas(gi_rz, gi_n, self.w_hh_rz, self.w_hh_n, self.b_hn,
                          vmem_bytes=self._vmem_bytes, num_cores=self._num_cores)


# ----------------------------- Pure-JAX reference ------------------------------
def gru_reference(x_tbe, w_ih_t, w_hh_t, b_ih, b_hh):
    H = w_hh_t.shape[0]

    def step(h, x):
        gi = x @ w_ih_t + b_ih
        gh = h @ w_hh_t + b_hh
        r = jax.nn.sigmoid(gi[:, :H] + gh[:, :H])
        z = jax.nn.sigmoid(gi[:, H:2 * H] + gh[:, H:2 * H])
        n = jnp.tanh(gi[:, 2 * H:] + r * gh[:, 2 * H:])
        h_new = (1.0 - z) * n + z * h
        return h_new, h_new

    h0 = jnp.zeros((x_tbe.shape[1], H), jnp.float32)
    _, outs = jax.lax.scan(step, h0, x_tbe)
    return outs


def _reference_out(enc, text):
    emb = jnp.take(enc.embed, text, axis=0)
    out_tbh = gru_reference(jnp.transpose(emb, (1, 0, 2)),
                            enc.w_ih_t, enc.w_hh_t, enc.b_ih, enc.b_hh)
    return jnp.transpose(out_tbh, (1, 0, 2))


if __name__ == "__main__":
    V, H, E = 50, 32, 64   # size_feature, size (hidden), size_embed
    enc = TextEncoderBottomPallas(size_feature=V, size=H, size_embed=E)

    # small shape consistent with the module: (batch=2, seq=8) -> single chunk, single block
    B, T = 2, 8
    text = jax.random.randint(jax.random.PRNGKey(0), (B, T), 0, V, dtype=jnp.int32)
    out = jax.block_until_ready(enc(text))
    assert out.shape == (B, T, H), out.shape
    assert jnp.allclose(out, _reference_out(enc, text), atol=1e-4, rtol=1e-4)

    # longer sequence exercises the multi-time-chunk path (h carried across grid steps)
    B2, T2 = 2, 80
    text2 = jax.random.randint(jax.random.PRNGKey(1), (B2, T2), 0, V, dtype=jnp.int32)
    out2 = jax.block_until_ready(enc(text2))
    assert out2.shape == (B2, T2, H), out2.shape
    assert jnp.allclose(out2, _reference_out(enc, text2), atol=1e-4, rtol=1e-4)

    # B > 128 exercises the multi-batch-block path (nb > 1 on the "parallel" grid axis)
    B3, T3 = 144, 80
    text3 = jax.random.randint(jax.random.PRNGKey(2), (B3, T3), 0, V, dtype=jnp.int32)
    out3 = jax.block_until_ready(enc(text3))
    assert out3.shape == (B3, T3, H), out3.shape
    assert jnp.allclose(out3, _reference_out(enc, text3), atol=1e-4, rtol=1e-4)

    # bf16-gi variant (halves the dominant HBM->VMEM stream); gate math stays f32 in-kernel.
    enc_bf16 = TextEncoderBottomPallas(size_feature=V, size=H, size_embed=E,
                                       gi_dtype=jnp.bfloat16)
    out_bf16 = jax.block_until_ready(enc_bf16(text2))
    assert out_bf16.shape == (B2, T2, H)
    assert bool(jnp.all(jnp.isfinite(out_bf16)))

    print("KERNEL_OK")
</pallas_src>

<mosaic_0001>
module attributes {stable_mosaic.version = 11 : i64} {
  func.func @gru_chunk_kernel(%arg0: i32, %arg1: i32, %arg2: memref<8x8x64xf32, #tpu.memory_space<vmem>>, %arg3: memref<8x8x32xf32, #tpu.memory_space<vmem>>, %arg4: memref<32x64xf32, #tpu.memory_space<vmem>>, %arg5: memref<32x32xf32, #tpu.memory_space<vmem>>, %arg6: memref<1x32xf32, #tpu.memory_space<vmem>>, %arg7: memref<8x2x128xf32, #tpu.memory_space<vmem>>, %arg8: memref<8x32xf32, #tpu.memory_space<vmem>>) attributes {dimension_semantics = [#tpu.dimension_semantics<parallel>, #tpu.dimension_semantics<arbitrary>], iteration_bounds = array<i64: 1, 1>, scalar_prefetch = 0 : i64, scratch_operands = 1 : i64, tpu.core_type = #tpu.core_type<tc>, window_params = [{transform_indices = @transform_0, window_bounds = array<i64: 8, 8, 64>}, {transform_indices = @transform_1, window_bounds = array<i64: 8, 8, 32>}, {pipeline_mode = #tpu.pipeline_mode<synchronous>, transform_indices = @transform_2, window_bounds = array<i64: 32, 64>}, {pipeline_mode = #tpu.pipeline_mode<synchronous>, transform_indices = @transform_3, window_bounds = array<i64: 32, 32>}, {pipeline_mode = #tpu.pipeline_mode<synchronous>, transform_indices = @transform_4, window_bounds = array<i64: 1, 32>}, {transform_indices = @transform_5, window_bounds = array<i64: 8, 2, 128>}]} {
    %c0_i32 = arith.constant 0 : i32
    %0 = arith.cmpi eq, %arg1, %c0_i32 : i32
    %1 = arith.extui %0 : i1 to i32
    %c0_i32_0 = arith.constant 0 : i32
    %2 = arith.cmpi ne, %1, %c0_i32_0 : i32
    scf.if %2 {
      %cst = arith.constant 0.000000e+00 : f32
      %12 = vector.broadcast %cst : f32 to vector<8x32xf32>
      %c0_12 = arith.constant 0 : index
      %c0_13 = arith.constant 0 : index
      %13 = vector.load %arg8[%c0_12, %c0_13] : memref<8x32xf32, #tpu.memory_space<vmem>>, vector<8x32xf32>
      tpu.vector_store %arg8[%c0_12, %c0_13], %12 {strides = array<i32>} : memref<8x32xf32, #tpu.memory_space<vmem>>, vector<8x32xf32>,
    } else {
    }
    %c0 = arith.constant 0 : index
    %c0_1 = arith.constant 0 : index
    %3 = vector.load %arg4[%c0, %c0_1] : memref<32x64xf32, #tpu.memory_space<vmem>>, vector<32x64xf32>
    %c0_2 = arith.constant 0 : index
    %c0_3 = arith.constant 0 : index
    %4 = vector.load %arg5[%c0_2, %c0_3] : memref<32x32xf32, #tpu.memory_space<vmem>>, vector<32x32xf32>
    %c0_4 = arith.constant 0 : index
    %c0_5 = arith.constant 0 : index
    %5 = vector.load %arg6[%c0_4, %c0_5] : memref<1x32xf32, #tpu.memory_space<vmem>>, vector<1x32xf32>
    %6 = vector.shape_cast %5 : vector<1x32xf32> to vector<1x32xf32>
    %7 = vector.broadcast %6 : vector<1x32xf32> to vector<8x32xf32>
    %c0_6 = arith.constant 0 : index
    %c0_7 = arith.constant 0 : index
    %8 = vector.load %arg8[%c0_6, %c0_7] : memref<8x32xf32, #tpu.memory_space<vmem>>, vector<8x32xf32>
    %c0_i32_8 = arith.constant 0 : i32
    %c2_i32 = arith.constant 2 : i32
    %9 = arith.addi %c0_i32_8, %c2_i32 : i32
    %c1_i32 = arith.constant 1 : i32
    %10 = scf.for %arg9 = %c0_i32_8 to %9 step %c1_i32 iter_args(%arg10 = %8) -> (vector<8x32xf32>)  : i32 {
      %c4_i32 = arith.constant 4 : i32
      %12 = arith.muli %arg9, %c4_i32 : i32
      %c0_i32_12 = arith.constant 0 : i32
      %13 = arith.addi %12, %c0_i32_12 : i32
      %c0_13 = arith.constant 0 : index
      %14 = arith.index_cast %13 : i32 to index
      %c0_14 = arith.constant 0 : index
      %15 = vector.load %arg2[%c0_13, %14, %c0_14] : memref<8x8x64xf32, #tpu.memory_space<vmem>>, vector<8x1x64xf32>
      %16 = vector.shape_cast %15 : vector<8x1x64xf32> to vector<8x64xf32>
      %c0_15 = arith.constant 0 : index
      %17 = arith.index_cast %13 : i32 to index
      %c0_16 = arith.constant 0 : index
      %18 = vector.load %arg3[%c0_15, %17, %c0_16] : memref<8x8x32xf32, #tpu.memory_space<vmem>>, vector<8x1x32xf32>
      %19 = vector.shape_cast %18 : vector<8x1x32xf32> to vector<8x32xf32>
      %cst = arith.constant dense<0.000000e+00> : vector<8x64xf32>
      %20 = tpu.matmul %arg10, %3, %cst {dimension_numbers = #tpu.dot_dimension_numbers<[1], [0], [0], [1], [0, 0, 1, 1], [], []>} : vector<8x32xf32>, vector<32x64xf32>, vector<8x64xf32> -> vector<8x64xf32>
      %cst_17 = arith.constant dense<0.000000e+00> : vector<8x32xf32>
      %21 = tpu.matmul %arg10, %4, %cst_17 {dimension_numbers = #tpu.dot_dimension_numbers<[1], [0], [0], [1], [0, 0, 1, 1], [], []>} : vector<8x32xf32>, vector<32x32xf32>, vector<8x32xf32> -> vector<8x32xf32>
      %22 = arith.addf %21, %7 : vector<8x32xf32>
      %23 = arith.addf %16, %20 : vector<8x64xf32>
      %24 = arith.negf %23 : vector<8x64xf32>
      %25 = math.exp %24 : vector<8x64xf32>
      %cst_18 = arith.constant 1.000000e+00 : f32
      %26 = vector.broadcast %cst_18 : f32 to vector<8x64xf32>
      %27 = arith.addf %26, %25 : vector<8x64xf32>
      %28 = arith.divf %26, %27 : vector<8x64xf32>
      %29 = vector.extract_strided_slice %28 {offsets = [0, 0], sizes = [8, 32], strides = [1, 1]} : vector<8x64xf32> to vector<8x32xf32>
      %30 = vector.extract_strided_slice %28 {offsets = [0, 32], sizes = [8, 32], strides = [1, 1]} : vector<8x64xf32> to vector<8x32xf32>
      %31 = arith.mulf %29, %22 : vector<8x32xf32>
      %32 = arith.addf %19, %31 : vector<8x32xf32>
      %33 = math.tanh %32 : vector<8x32xf32>
      %34 = arith.subf %arg10, %33 : vector<8x32xf32>
      %35 = arith.mulf %30, %34 : vector<8x32xf32>
      %36 = arith.addf %33, %35 : vector<8x32xf32>
      %37 = vector.shape_cast %36 : vector<8x32xf32> to vector<8x1x32xf32>
      %c0_19 = arith.constant 0 : index
      %38 = arith.index_cast %arg9 : i32 to index
      %c0_20 = arith.constant 0 : index
      %39 = vector.load %arg7[%c0_19, %38, %c0_20] : memref<8x2x128xf32, #tpu.memory_space<vmem>>, vector<8x1x32xf32>
      tpu.vector_store %arg7[%c0_19, %38, %c0_20], %37 {strides = array<i32>} : memref<8x2x128xf32, #tpu.memory_space<vmem>>, vector<8x1x32xf32>,
      %c4_i32_21 = arith.constant 4 : i32
      %40 = arith.muli %arg9, %c4_i32_21 : i32
      %c1_i32_22 = arith.constant 1 : i32
      %41 = arith.addi %40, %c1_i32_22 : i32
      %c0_23 = arith.constant 0 : index
      %42 = arith.index_cast %41 : i32 to index
      %c0_24 = arith.constant 0 : index
      %43 = vector.load %arg2[%c0_23, %42, %c0_24] : memref<8x8x64xf32, #tpu.memory_space<vmem>>, vector<8x1x64xf32>
      %44 = vector.shape_cast %43 : vector<8x1x64xf32> to vector<8x64xf32>
      %c0_25 = arith.constant 0 : index
      %45 = arith.index_cast %41 : i32 to index
      %c0_26 = arith.constant 0 : index
      %46 = vector.load %arg3[%c0_25, %45, %c0_26] : memref<8x8x32xf32, #tpu.memory_space<vmem>>, vector<8x1x32xf32>
      %47 = vector.shape_cast %46 : vector<8x1x32xf32> to vector<8x32xf32>
      %cst_27 = arith.constant dense<0.000000e+00> : vector<8x64xf32>
      %48 = tpu.matmul %36, %3, %cst_27 {dimension_numbers = #tpu.dot_dimension_numbers<[1], [0], [0], [1], [0, 0, 1, 1], [], []>} : vector<8x32xf32>, vector<32x64xf32>, vector<8x64xf32> -> vector<8x64xf32>
      %cst_28 = arith.constant dense<0.000000e+00> : vector<8x32xf32>
      %49 = tpu.matmul %36, %4, %cst_28 {dimension_numbers = #tpu.dot_dimension_numbers<[1], [0], [0], [1], [0, 0, 1, 1], [], []>} : vector<8x32xf32>, vector<32x32xf32>, vector<8x32xf32> -> vector<8x32xf32>
      %50 = arith.addf %49, %7 : vector<8x32xf32>
      %51 = arith.addf %44, %48 : vector<8x64xf32>
      %52 = arith.negf %51 : vector<8x64xf32>
      %53 = math.exp %52 : vector<8x64xf32>
      %cst_29 = arith.constant 1.000000e+00 : f32
      %54 = vector.broadcast %cst_29 : f32 to vector<8x64xf32>
      %55 = arith.addf %54, %53 : vector<8x64xf32>
      %56 = arith.divf %54, %55 : vector<8x64xf32>
      %57 = vector.extract_strided_slice %56 {offsets = [0, 0], sizes = [8, 32], strides = [1, 1]} : vector<8x64xf32> to vector<8x32xf32>
      %58 = vector.extract_strided_slice %56 {offsets = [0, 32], sizes = [8, 32], strides = [1, 1]} : vector<8x64xf32> to vector<8x32xf32>
      %59 = arith.mulf %57, %50 : vector<8x32xf32>
      %60 = arith.addf %47, %59 : vector<8x32xf32>
      %61 = math.tanh %60 : vector<8x32xf32>
      %62 = arith.subf %36, %61 : vector<8x32xf32>
      %63 = arith.mulf %58, %62 : vector<8x32xf32>
      %64 = arith.addf %61, %63 : vector<8x32xf32>
      %65 = vector.shape_cast %64 : vector<8x32xf32> to vector<8x1x32xf32>
      %c0_30 = arith.constant 0 : index
      %66 = arith.index_cast %arg9 : i32 to index
      %c32 = arith.constant 32 : index
      %67 = vector.load %arg7[%c0_30, %66, %c32] : memref<8x2x128xf32, #tpu.memory_space<vmem>>, vector<8x1x32xf32>
      tpu.vector_store %arg7[%c0_30, %66, %c32], %65 {strides = array<i32>} : memref<8x2x128xf32, #tpu.memory_space<vmem>>, vector<8x1x32xf32>,
      %c4_i32_31 = arith.constant 4 : i32
      %68 = arith.muli %arg9, %c4_i32_31 : i32
      %c2_i32_32 = arith.constant 2 : i32
      %69 = arith.addi %68, %c2_i32_32 : i32
      %c0_33 = arith.constant 0 : index
      %70 = arith.index_cast %69 : i32 to index
      %c0_34 = arith.constant 0 : index
      %71 = vector.load %arg2[%c0_33, %70, %c0_34] : memref<8x8x64xf32, #tpu.memory_space<vmem>>, vector<8x1x64xf32>
      %72 = vector.shape_cast %71 : vector<8x1x64xf32> to vector<8x64xf32>
      %c0_35 = arith.constant 0 : index
      %73 = arith.index_cast %69 : i32 to index
      %c0_36 = arith.constant 0 : index
      %74 = vector.load %arg3[%c0_35, %73, %c0_36] : memref<8x8x32xf32, #tpu.memory_space<vmem>>, vector<8x1x32xf32>
      %75 = vector.shape_cast %74 : vector<8x1x32xf32> to vector<8x32xf32>
      %cst_37 = arith.constant dense<0.000000e+00> : vector<8x64xf32>
      %76 = tpu.matmul %64, %3, %cst_37 {dimension_numbers = #tpu.dot_dimension_numbers<[1], [0], [0], [1], [0, 0, 1, 1], [], []>} : vector<8x32xf32>, vector<32x64xf32>, vector<8x64xf32> -> vector<8x64xf32>
      %cst_38 = arith.constant dense<0.000000e+00> : vector<8x32xf32>
      %77 = tpu.matmul %64, %4, %cst_38 {dimension_numbers = #tpu.dot_dimension_numbers<[1], [0], [0], [1], [0, 0, 1, 1], [], []>} : vector<8x32xf32>, vector<32x32xf32>, vector<8x32xf32> -> vector<8x32xf32>
      %78 = arith.addf %77, %7 : vector<8x32xf32>
      %79 = arith.addf %72, %76 : vector<8x64xf32>
      %80 = arith.negf %79 : vector<8x64xf32>
      %81 = math.exp %80 : vector<8x64xf32>
      %cst_39 = arith.constant 1.000000e+00 : f32
      %82 = vector.broadcast %cst_39 : f32 to vector<8x64xf32>
      %83 = arith.addf %82, %81 : vector<8x64xf32>
      %84 = arith.divf %82, %83 : vector<8x64xf32>
      %85 = vector.extract_strided_slice %84 {offsets = [0, 0], sizes = [8, 32], strides = [1, 1]} : vector<8x64xf32> to vector<8x32xf32>
      %86 = vector.extract_strided_slice %84 {offsets = [0, 32], sizes = [8, 32], strides = [1, 1]} : vector<8x64xf32> to vector<8x32xf32>
      %87 = arith.mulf %85, %78 : vector<8x32xf32>
      %88 = arith.addf %75, %87 : vector<8x32xf32>
      %89 = math.tanh %88 : vector<8x32xf32>
      %90 = arith.subf %64, %89 : vector<8x32xf32>
      %91 = arith.mulf %86, %90 : vector<8x32xf32>
      %92 = arith.addf %89, %91 : vector<8x32xf32>
      %93 = vector.shape_cast %92 : vector<8x32xf32> to vector<8x1x32xf32>
      %c0_40 = arith.constant 0 : index
      %94 = arith.index_cast %arg9 : i32 to index
      %c64 = arith.constant 64 : index
      %95 = vector.load %arg7[%c0_40, %94, %c64] : memref<8x2x128xf32, #tpu.memory_space<vmem>>, vector<8x1x32xf32>
      tpu.vector_store %arg7[%c0_40, %94, %c64], %93 {strides = array<i32>} : memref<8x2x128xf32, #tpu.memory_space<vmem>>, vector<8x1x32xf32>,
      %c4_i32_41 = arith.constant 4 : i32
      %96 = arith.muli %arg9, %c4_i32_41 : i32
      %c3_i32 = arith.constant 3 : i32
      %97 = arith.addi %96, %c3_i32 : i32
      %c0_42 = arith.constant 0 : index
      %98 = arith.index_cast %97 : i32 to index
      %c0_43 = arith.constant 0 : index
      %99 = vector.load %arg2[%c0_42, %98, %c0_43] : memref<8x8x64xf32, #tpu.memory_space<vmem>>, vector<8x1x64xf32>
      %100 = vector.shape_cast %99 : vector<8x1x64xf32> to vector<8x64xf32>
      %c0_44 = arith.constant 0 : index
      %101 = arith.index_cast %97 : i32 to index
      %c0_45 = arith.constant 0 : index
      %102 = vector.load %arg3[%c0_44, %101, %c0_45] : memref<8x8x32xf32, #tpu.memory_space<vmem>>, vector<8x1x32xf32>
      %103 = vector.shape_cast %102 : vector<8x1x32xf32> to vector<8x32xf32>
      %cst_46 = arith.constant dense<0.000000e+00> : vector<8x64xf32>
      %104 = tpu.matmul %92, %3, %cst_46 {dimension_numbers = #tpu.dot_dimension_numbers<[1], [0], [0], [1], [0, 0, 1, 1], [], []>} : vector<8x32xf32>, vector<32x64xf32>, vector<8x64xf32> -> vector<8x64xf32>
      %cst_47 = arith.constant dense<0.000000e+00> : vector<8x32xf32>
      %105 = tpu.matmul %92, %4, %cst_47 {dimension_numbers = #tpu.dot_dimension_numbers<[1], [0], [0], [1], [0, 0, 1, 1], [], []>} : vector<8x32xf32>, vector<32x32xf32>, vector<8x32xf32> -> vector<8x32xf32>
      %106 = arith.addf %105, %7 : vector<8x32xf32>
      %107 = arith.addf %100, %104 : vector<8x64xf32>
      %108 = arith.negf %107 : vector<8x64xf32>
      %109 = math.exp %108 : vector<8x64xf32>
      %cst_48 = arith.constant 1.000000e+00 : f32
      %110 = vector.broadcast %cst_48 : f32 to vector<8x64xf32>
      %111 = arith.addf %110, %109 : vector<8x64xf32>
      %112 = arith.divf %110, %111 : vector<8x64xf32>
      %113 = vector.extract_strided_slice %112 {offsets = [0, 0], sizes = [8, 32], strides = [1, 1]} : vector<8x64xf32> to vector<8x32xf32>
      %114 = vector.extract_strided_slice %112 {offsets = [0, 32], sizes = [8, 32], strides = [1, 1]} : vector<8x64xf32> to vector<8x32xf32>
      %115 = arith.mulf %113, %106 : vector<8x32xf32>
      %116 = arith.addf %103, %115 : vector<8x32xf32>
      %117 = math.tanh %116 : vector<8x32xf32>
      %118 = arith.subf %92, %117 : vector<8x32xf32>
      %119 = arith.mulf %114, %118 : vector<8x32xf32>
      %120 = arith.addf %117, %119 : vector<8x32xf32>
      %121 = vector.shape_cast %120 : vector<8x32xf32> to vector<8x1x32xf32>
      %c0_49 = arith.constant 0 : index
      %122 = arith.index_cast %arg9 : i32 to index
      %c96 = arith.constant 96 : index
      %123 = vector.load %arg7[%c0_49, %122, %c96] : memref<8x2x128xf32, #tpu.memory_space<vmem>>, vector<8x1x32xf32>
      tpu.vector_store %arg7[%c0_49, %122, %c96], %121 {strides = array<i32>} : memref<8x2x128xf32, #tpu.memory_space<vmem>>, vector<8x1x32xf32>,
      scf.yield %120 : vector<8x32xf32>
    }
    %c2_i32_9 = arith.constant 2 : i32
    %c0_10 = arith.constant 0 : index
    %c0_11 = arith.constant 0 : index
    %11 = vector.load %arg8[%c0_10, %c0_11] : memref<8x32xf32, #tpu.memory_space<vmem>>, vector<8x32xf32>
    tpu.vector_store %arg8[%c0_10, %c0_11], %10 {strides = array<i32>} : memref<8x32xf32, #tpu.memory_space<vmem>>, vector<8x32xf32>,
    return
  }
  func.func @transform_0(%arg0: i32, %arg1: i32) -> (i32, i32, i32) {
    %c0_i32 = arith.constant 0 : i32
    %c0_i32_0 = arith.constant 0 : i32
    return %arg0, %arg1, %c0_i32 : i32, i32, i32
  }
  func.func @transform_1(%arg0: i32, %arg1: i32) -> (i32, i32, i32) {
    %c0_i32 = arith.constant 0 : i32
    %c0_i32_0 = arith.constant 0 : i32
    return %arg0, %arg1, %c0_i32 : i32, i32, i32
  }
  func.func @transform_2(%arg0: i32, %arg1: i32) -> (i32, i32) {
    %c0_i32 = arith.constant 0 : i32
    %c0_i32_0 = arith.constant 0 : i32
    %c0_i32_1 = arith.constant 0 : i32
    return %c0_i32, %c0_i32_0 : i32, i32
  }
  func.func @transform_3(%arg0: i32, %arg1: i32) -> (i32, i32) {
    %c0_i32 = arith.constant 0 : i32
    %c0_i32_0 = arith.constant 0 : i32
    %c0_i32_1 = arith.constant 0 : i32
    return %c0_i32, %c0_i32_0 : i32, i32
  }
  func.func @transform_4(%arg0: i32, %arg1: i32) -> (i32, i32) {
    %c0_i32 = arith.constant 0 : i32
    %c0_i32_0 = arith.constant 0 : i32
    %c0_i32_1 = arith.constant 0 : i32
    return %c0_i32, %c0_i32_0 : i32, i32
  }
  func.func @transform_5(%arg0: i32, %arg1: i32) -> (i32, i32, i32) {
    %c0_i32 = arith.constant 0 : i32
    %c0_i32_0 = arith.constant 0 : i32
    return %arg0, %arg1, %c0_i32 : i32, i32, i32
  }
}

</mosaic_0001>

<bundles_post_ra>
// kernel: a_call__.1
= control target key start
LH: loop header
LB: loop body
LE: loop exit
PB: predicated region body
PF: predicated region fallthrough
CT: control target
= control target key end

     0   :  { %vm24_vm0 = vcmask 261120   ;;  %v2256_v0 = vmov 0.0   ;;  %s2341_s10 = smov 0   ;;  %s2998_s0 = inlined_call_operand.vmem [shape: f32[8,8,64], index: 0, kind: input, shape index: {}]   ;;  %s2999_s1 = inlined_call_operand.vmem [shape: f32[8,8,32], index: 1, kind: input, shape index: {}]   ;;  %s3000_s2 = inlined_call_operand.vmem [shape: f32[32,64], index: 2, kind: input, shape index: {}]   ;;  %s3001_s3 = inlined_call_operand.vmem [shape: f32[32,32], index: 3, kind: input, shape index: {}]   ;;  %s3002_s4 = inlined_call_operand.vmem [shape: f32[1,32], index: 4, kind: input, shape index: {}]   ;;  %s3003_s5 = inlined_call_operand.vmem [shape: f32[8,2,128], index: 5, kind: output, shape index: {}]  }
   0x1   :  { %25 = vst.msk [vmem:[#allocation2] sm:$0xff] %vm24_vm0, %v2256_v0  ;;  %v2297_v1 = vld [vmem:[%s3000_s2] sm:$0xff]  ;;  %v2302_v2 = vld [vmem:[%s3000_s2 + $0x8] sm:$0xff]  ;;  %v2307_v3 = vld [vmem:[%s3000_s2 + $0x10] sm:$0xff] }
   0x2   :  { %v2312_v4 = vld [vmem:[%s3000_s2 + $0x18] sm:$0xff]  ;;  %v2317_v5 = vld [vmem:[%s3001_s3] sm:$0xff]  ;;  %v2322_v6 = vld [vmem:[%s3001_s3 + $0x8] sm:$0xff] }
   0x3   :  { %v2327_v7 = vld [vmem:[%s3001_s3 + $0x10] sm:$0xff]  ;;  %v2332_v8 = vld [vmem:[%s3001_s3 + $0x18] sm:$0xff]  ;;  %v2337_v9 = vld [vmem:[%s3002_s4] ss:$0 sm:$0xff] }
   0x8   :  { %v41_v10 = vld [vmem:[#allocation2] sm:$0xff]  }
   0x9 LB: > { %v2351_v11 = vpack.c.bf16 %v2302_v2, %v2297_v1  ;;  %v2257_v12 = vmov 0.0|0.0   ;;  %v2357_v13 = vpack.c.bf16 %v2322_v6, %v2317_v5  ;;  %v2362_v14 = vpack.c.bf16 %v2312_v4, %v2307_v3  ;;  %s1754_s3 = sshll.u32 %s2254_s10, 2  ;;  %s2260_s16 = smov 32   ;;  %s2254_s10 = sphi %s2341_s10, %s47_s10   ;;  %v2250_v10 = vphi %v41_v10, %v3004_v10  }
   0xa   : > { %1977 = vmatprep.subr.bf16.mxu0 %v2257_v12  ;;  %1983 = vmatprep.subr.bf16.mxu1 %v2257_v12  ;;  %vm2258_vm1 = vmmov 0   ;;  %v2259_v15 = vmov 0.0   ;;  %v2370_v16 = vpack.c.bf16 %v2332_v8, %v2327_v7  ;;  %s2401_s12 = scalar_lea.vmem %s2998_s0, %s1754_s3  ;;  %s2417_s15 = scalar_lea.vmem %s2999_s1, %s1754_s3  ;;  %vm333_vm2 = vcmask 1041409  }
   0xb   : > { %1979 = vmatpush3.bf16.msra.mxu0 %v2351_v11  ;;  %1897 = vmatprep.mubr.msk.f32.mxu0 %vm2258_vm1, %v2259_v15  ;;  %v51_v17 = vld [vmem:[%s2401_s12] sm:$0x1]  ;;  %v52_v18 = vld [vmem:[%s2401_s12 + $0x8] sm:$0x1]  ;;  %v53_v19 = vld [vmem:[%s2401_s12 + $0x10] sm:$0x1]  ;;  %s2511_s20 = scalar_lea.vmem %s3003_s5, %s2254_s10 }
   0xc   : > { %1980 = vmatprep.subr.bf16.mxu0 %v2257_v12  ;;  %1985 = vmatpush3.bf16.msra.mxu1 %v2357_v13  ;;  %v54_v20 = vld [vmem:[%s2401_s12 + $0x18] sm:$0x1]  ;;  %v55_v21 = vld [vmem:[%s2401_s12 + $0x20] sm:$0x1]  ;;  %v56_v22 = vld [vmem:[%s2401_s12 + $0x28] sm:$0x1] }
   0xd   : > { %1986 = vmatprep.subr.bf16.mxu1 %v2257_v12  ;;  %1908 = vmatprep.mubr.msk.f32.mxu1 %vm2258_vm1, %v2259_v15  ;;  %v57_v23 = vld [vmem:[%s2401_s12 + $0x30] sm:$0x1]  ;;  %v58_v31 = vld [vmem:[%s2401_s12 + $0x38] sm:$0x1]  ;;  %vm336_vm3 = vcmask 1042434   ;;  %vm339_vm4 = vcmask 1043459  }
   0xe   : > { %vm342_vm5 = vcmask 1044484   ;;  %vm345_vm6 = vcmask 1045509   ;;  %vm348_vm7 = vcmask 1046534   ;;  %vm351_vm8 = vcmask 1047559   ;;  %s2261_s17 = smov 96   ;;  %s2262_s21 = smov 64  }
   0xf   : > { %1982 = vmatpush3.bf16.msra.mxu0 %v2362_v14  ;;  %vm436_vm9 = vcmask 253952   ;;  %vm860_vm10 = vcmask 516352   ;;  %vm1276_vm11 = vcmask 778752   ;;  %vm1692_vm12 = vcmask 1041152   ;;  %s47_s10 = sadd.s32 1, %s2254_s10  }
  0x10   : > { %1988 = vmatpush3.bf16.msra.mxu1 %v2370_v16  ;;  %1989 = vmatprep.subr.bf16.mxu0 %v2257_v12  ;;  %p44_p0 = scmp.ge.s32.totalorder %s47_s10, 2  }
  0x11   : > { %1995 = vmatprep.subr.bf16.mxu1 %v2257_v12 }
  0x12   : > { %1898 = vmatmul.mubr.msk.f32.vlgmr.msra.gmra.mrb[0].mxu0 %vm24_vm0, %v2250_v10 }
  0x13   : > { %1909 = vmatmul.mubr.msk.f32.vlgmr.msra.gmra.mrb[0].mxu1 %vm24_vm0, %v2250_v10  ;;  %1991 = vmatpush3.bf16.msra.mxu0 %v2351_v11 }
  0x14   : > { %1997 = vmatpush3.bf16.msra.mxu1 %v2357_v13  ;;  %1992 = vmatprep.subr.bf16.mxu0 %v2257_v12 }
  0x15   : > { %1998 = vmatprep.subr.bf16.mxu1 %v2257_v12  ;;  %1919 = vmatprep.mubr.msk.f32.mxu0 %vm2258_vm1, %v2259_v15 }
  0x16   : > { %1930 = vmatprep.mubr.msk.f32.mxu1 %vm2258_vm1, %v2259_v15 }
  0x17   : > { %1994 = vmatpush3.bf16.msra.mxu0 %v2362_v14 }
  0x18   : > { %2000 = vmatpush3.bf16.msra.mxu1 %v2370_v16  ;;  %2001 = vmatprep.subr.bf16.mxu0 %v2257_v12 }
  0x19   : > { %2007 = vmatprep.subr.bf16.mxu1 %v2257_v12 }
  0xe5   : > { %v138_v24 = vpop.f32.mrb[0].mxu0 }
  0xe6   : > { %v213_v25 = vrot.slane %v138_v24, 1  ;;  %v214_v26 = vrot.slane %v138_v24, 2  ;;  %v215_v27 = vrot.slane %v138_v24, 3  ;;  %v216_v28 = vrot.slane %v138_v24, 4  ;;  %v1899_v29 = vpop.f32.mrb[1].mxu0  ;;  %v208_v30 = vpop.f32.mrb[0].mxu1 }
  0xe7   : > { %v217_v32 = vrot.slane %v138_v24, 5  ;;  %v218_v33 = vrot.slane %v138_v24, 6  ;;  %v219_v34 = vrot.slane %v138_v24, 7  ;;  %v228_v35 = vadd.f32 %v138_v24, %v51_v17  ;;  %v1910_v36 = vpop.f32.mrb[1].mxu1  ;;  %v60_v24 = vld [vmem:[%s2417_s15] sm:$0x1] }
  0xe8   : > { %v229_v37 = vadd.f32 %v213_v25, %v52_v18  ;;  %v230_v38 = vadd.f32 %v214_v26, %v53_v19  ;;  %v231_v39 = vadd.f32 %v215_v27, %v54_v20  ;;  %v232_v40 = vadd.f32 %v216_v28, %v55_v21  ;;  %v61_v27 = vld [vmem:[%s2417_s15 + $0x8] sm:$0x1] }
  0xe9   : > { %v233_v41 = vadd.f32 %v217_v32, %v56_v22  ;;  %v234_v42 = vadd.f32 %v218_v33, %v57_v23  ;;  %v1757_v43 = vmul.f32 -1.442695, %v228_v35  ;;  %v235_v44 = vadd.f32 %v219_v34, %v58_v31  ;;  %v62_v31 = vld [vmem:[%s2417_s15 + $0x10] sm:$0x1]  ;;  %v63_v35 = vld [vmem:[%s2417_s15 + $0x18] sm:$0x1] }
  0xea   : > { %v1758_v45 = vmul.f32 -1.442695, %v229_v37  ;;  %v1759_v46 = vmul.f32 -1.442695, %v230_v38  ;;  %v1760_v47 = vmul.f32 -1.442695, %v231_v39  ;;  %v209_v19 = vadd.f32 %v2337_v9, %v208_v30 }
  0xeb   : > { %2048 = vpow2.f32 %v1757_v43  ;;  %v1761_v48 = vmul.f32 -1.442695, %v232_v40  ;;  %v1762_v49 = vmul.f32 -1.442695, %v233_v41  ;;  %v1763_v50 = vmul.f32 -1.442695, %v234_v42 }
  0xec   : > { %2050 = vpow2.f32 %v1758_v45  ;;  %v1764_v51 = vmul.f32 -1.442695, %v235_v44  ;;  %v285_v21 = vrot.slane %v209_v19, 1  ;;  %v286_v22 = vrot.slane %v209_v19, 2  ;;  %v64_v40 = vld [vmem:[%s2417_s15 + $0x20] sm:$0x1] }
  0xed   : > { %2052 = vpow2.f32 %v1759_v46  ;;  %v287_v25 = vrot.slane %v209_v19, 3  ;;  %v288_v28 = vrot.slane %v209_v19, 4  ;;  %v289_v32 = vrot.slane %v209_v19, 5  ;;  %v65_v45 = vld [vmem:[%s2417_s15 + $0x28] sm:$0x1] }
  0xee   : > { %2054 = vpow2.f32 %v1760_v47  ;;  %v290_v36 = vrot.slane %v209_v19, 6  ;;  %v291_v41 = vrot.slane %v209_v19, 7 }
  0xef   : > { %2056 = vpow2.f32 %v1761_v48 }
  0xf0   : > { %2058 = vpow2.f32 %v1762_v49  ;;  %v66_v49 = vld [vmem:[%s2417_s15 + $0x30] sm:$0x1] }
  0xf1   : > { %2060 = vpow2.f32 %v1763_v50 }
  0xf2   : > { %2062 = vpow2.f32 %v1764_v51 }
  0xf5   : > { %v2049_v52 = vpop.eup %2048 }
  0xf6   : > { %v2051_v53 = vpop.eup %2050  ;;  %v260_v54 = vadd.f32 1.0, %v2049_v52 }
  0xf7   : > { %v2053_v55 = vpop.eup %2052  ;;  %v261_v56 = vadd.f32 1.0, %v2051_v53  ;;  %v67_v53 = vld [vmem:[%s2417_s15 + $0x38] sm:$0x1] }
  0xf8   : > { %v2055_v57 = vpop.eup %2054  ;;  %v262_v58 = vadd.f32 1.0, %v2053_v55  ;;  %2064 = vrcp.f32 %v260_v54 }
  0xf9   : > { %v2057_v59 = vpop.eup %2056  ;;  %v263_v60 = vadd.f32 1.0, %v2055_v57  ;;  %2066 = vrcp.f32 %v261_v56 }
  0xfa   : > { %v2059_v61 = vpop.eup %2058  ;;  %v264_v62 = vadd.f32 1.0, %v2057_v59  ;;  %2068 = vrcp.f32 %v262_v58 }
  0xfb   : > { %v2061_v63 = vpop.eup %2060  ;;  %v265_v0 = vadd.f32 1.0, %v2059_v61  ;;  %2070 = vrcp.f32 %v263_v60 }
  0xfc   : > { %v2063_v17 = vpop.eup %2062  ;;  %v266_v18 = vadd.f32 1.0, %v2061_v63  ;;  %2072 = vrcp.f32 %v264_v62 }
  0xfd   : > { %v267_v20 = vadd.f32 1.0, %v2063_v17  ;;  %2074 = vrcp.f32 %v265_v0 }
  0xfe   : > { %2076 = vrcp.f32 %v266_v18 }
  0xff   : > { %2078 = vrcp.f32 %v267_v20 }
 0x102   : > { %v2419_v23 = vpop.eup %2064 }
 0x103   : > { %v2422_v26 = vpop.eup %2066  ;;  %v300_v29 = vmul.f32 %v2419_v23, %v209_v19 }
 0x104   : > { %v2426_v30 = vpop.eup %2068  ;;  %v301_v33 = vmul.f32 %v2422_v26, %v285_v21 }
 0x105   : > { %v2430_v34 = vpop.eup %2070  ;;  %v302_v37 = vmul.f32 %v2426_v30, %v286_v22  ;;  %v308_v38 = vadd.f32 %v300_v29, %v60_v24 }
 0x106   : > { %v2434_v39 = vpop.eup %2072  ;;  %v303_v42 = vmul.f32 %v2430_v34, %v287_v25  ;;  %v309_v43 = vadd.f32 %v301_v33, %v61_v27 }
 0x107   : > { %v2438_v44 = vpop.eup %2074  ;;  %v304_v46 = vmul.f32 %v2434_v39, %v288_v28  ;;  %v310_v47 = vadd.f32 %v302_v37, %v62_v31  ;;  %2080 = vtanh.f32 %v308_v38 }
 0x108   : > { %v2442_v48 = vpop.eup %2076  ;;  %v305_v50 = vmul.f32 %v2438_v44, %v289_v32  ;;  %v311_v51 = vadd.f32 %v303_v42, %v63_v35  ;;  %2082 = vtanh.f32 %v309_v43 }
 0x109   : > { %v2446_v52 = vpop.eup %2078  ;;  %v306_v54 = vmul.f32 %v2442_v48, %v290_v36  ;;  %v312_v55 = vadd.f32 %v304_v46, %v64_v40  ;;  %2084 = vtanh.f32 %v310_v47 }
 0x10a   : > { %v307_v56 = vmul.f32 %v2446_v52, %v291_v41  ;;  %v313_v57 = vadd.f32 %v305_v50, %v65_v45  ;;  %2086 = vtanh.f32 %v311_v51 }
 0x10b   : > { %v314_v58 = vadd.f32 %v306_v54, %v66_v49  ;;  %2088 = vtanh.f32 %v312_v55 }
 0x10c   : > { %v315_v59 = vadd.f32 %v307_v56, %v67_v53  ;;  %2090 = vtanh.f32 %v313_v57 }
 0x10d   : > { %2092 = vtanh.f32 %v314_v58 }
 0x10e   : > { %2094 = vtanh.f32 %v315_v59 }
 0x111   : > { %v2451_v60 = vpop.eup %2080 }
 0x112   : > { %v2453_v61 = vpop.eup %2082 }
 0x113   : > { %v2455_v62 = vpop.eup %2084  ;;  %v332_v63 = vrot.slane %v2453_v61, 7 }
 0x114   : > { %v2458_v0 = vpop.eup %2086  ;;  %v335_v17 = vrot.slane %v2455_v62, 6 }
 0x115   : > { %v2461_v18 = vpop.eup %2088  ;;  %v334_v19 = vsel %vm333_vm2, %v332_v63, %v2451_v60  ;;  %v338_v20 = vrot.slane %v2458_v0, 5 }
 0x116   : > { %v2466_v21 = vpop.eup %2090  ;;  %v337_v22 = vsel %vm336_vm3, %v335_v17, %v334_v19  ;;  %v341_v24 = vrot.slane %v2461_v18, 4 }
 0x117   : > { %v2470_v25 = vpop.eup %2092  ;;  %v340_v27 = vsel %vm339_vm4, %v338_v20, %v337_v22  ;;  %v344_v28 = vrot.slane %v2466_v21, 3 }
 0x118   : > { %v2474_v29 = vpop.eup %2094  ;;  %v343_v31 = vsel %vm342_vm5, %v341_v24, %v340_v27  ;;  %v347_v32 = vrot.slane %v2470_v25, 2 }
 0x119   : > { %v346_v33 = vsel %vm345_vm6, %v344_v28, %v343_v31  ;;  %v350_v35 = vrot.slane %v2474_v29, 1 }
 0x11a   : > { %v349_v36 = vsel %vm348_vm7, %v347_v32, %v346_v33 }
 0x11b   : > { %v352_v37 = vsel %vm351_vm8, %v350_v35, %v349_v36 }
 0x11c   : > { %v354_v38 = vsub.f32 %v2250_v10, %v352_v37 }
 0x11e   : > { %363 = vrot.lane.b32.xlu1 %v354_v38, %s2260_s16  ;;  %v356_v40 = vrot.slane %v354_v38, 1  ;;  %v358_v41 = vrot.slane %v354_v38, 3  ;;  %v357_v42 = vrot.slane %v354_v38, 2  ;;  %v360_v43 = vrot.slane %v354_v38, 5 }
 0x11f   : > { %v359_v45 = vrot.slane %v354_v38, 4  ;;  %v362_v46 = vrot.slane %v354_v38, 7  ;;  %v361_v10 = vrot.slane %v354_v38, 6 }
 0x120   : > { %365 = vrot.lane.b32.xlu0 %v356_v40, %s2260_s16 }
 0x122   : > { %369 = vrot.lane.b32.xlu1 %v358_v41, %s2260_s16 }
 0x124   : > { %367 = vrot.lane.b32.xlu0 %v357_v42, %s2260_s16 }
 0x126   : > { %373 = vrot.lane.b32.xlu1 %v360_v43, %s2260_s16 }
 0x128   : > { %371 = vrot.lane.b32.xlu0 %v359_v45, %s2260_s16 }
 0x12a   : > { %377 = vrot.lane.b32.xlu1 %v362_v46, %s2260_s16  ;;  %v1767_v46 = vld [vmem:[%s2401_s12 + $0x9] sm:$0x1] }
 0x12c   : > { %375 = vrot.lane.b32.xlu0 %v361_v10, %s2260_s16  ;;  %v1768_v10 = vld [vmem:[%s2401_s12 + $0x11] sm:$0x1] }
 0x190   : > { %v364_v47 = vpop.permute.xlu1 %363 }
 0x191   : > { %v387_v49 = vmul.f32 %v2419_v23, %v364_v47  ;;  %v1769_v47 = vld [vmem:[%s2401_s12 + $0x19] sm:$0x1] }
 0x192   : > { %v366_v50 = vpop.permute.xlu0 %365 }
 0x193   : > { %403 = vrot.lane.b32.xlu0 %v387_v49, %s2261_s17  ;;  %v388_v53 = vmul.f32 %v2422_v26, %v366_v50  ;;  %v1770_v49 = vld [vmem:[%s2401_s12 + $0x21] sm:$0x1]  ;;  %v1771_v50 = vld [vmem:[%s2401_s12 + $0x29] sm:$0x1] }
 0x194   : > { %v370_v51 = vpop.permute.xlu1 %369 }
 0x195   : > { %v390_v58 = vmul.f32 %v2430_v34, %v370_v51  ;;  %v1772_v51 = vld [vmem:[%s2401_s12 + $0x31] sm:$0x1] }
 0x196   : > { %v368_v54 = vpop.permute.xlu0 %367 }
 0x197   : > { %v389_v55 = vmul.f32 %v2426_v30, %v368_v54  ;;  %405 = vrot.lane.b32.xlu0 %v388_v53, %s2261_s17 }
 0x198   : > { %v374_v56 = vpop.permute.xlu1 %373 }
 0x199   : > { %407 = vrot.lane.b32.xlu1 %v389_v55, %s2261_s17  ;;  %v392_v26 = vmul.f32 %v2438_v44, %v374_v56 }
 0x19a   : > { %v372_v57 = vpop.permute.xlu0 %371 }
 0x19b   : > { %v391_v23 = vmul.f32 %v2434_v39, %v372_v57 }
 0x19c   : > { %v378_v63 = vpop.permute.xlu1 %377 }
 0x19d   : > { %409 = vrot.lane.b32.xlu1 %v390_v58, %s2261_s17  ;;  %411 = vrot.lane.b32.xlu0 %v391_v23, %s2261_s17  ;;  %v394_v17 = vmul.f32 %v2446_v52, %v378_v63 }
 0x19e   : > { %v376_v59 = vpop.permute.xlu0 %375 }
 0x19f   : > { %v393_v30 = vmul.f32 %v2442_v48, %v376_v59 }
 0x1a1   : > { %413 = vrot.lane.b32.xlu1 %v392_v26, %s2261_s17  ;;  %415 = vrot.lane.b32.xlu0 %v393_v30, %s2261_s17  ;;  %v1773_v26 = vld [vmem:[%s2401_s12 + $0x39] sm:$0x1] }
 0x1a5   : > { %417 = vrot.lane.b32.xlu1 %v394_v17, %s2261_s17 }
 0x205   : > { %v404_v34 = vpop.permute.xlu0 %403 }
 0x206   : > { %v2514_v39 = vadd.f32 %v2451_v60, %v404_v34 }
 0x208   : > { %437 = vst.msk [vmem:[%s2511_s20] sm:$0x1] %vm436_vm9, %v2514_v39 }
 0x209   : > { %v406_v44 = vpop.permute.xlu0 %405 }
 0x20a   : > { %v2520_v48 = vadd.f32 %v2453_v61, %v406_v44 }
 0x20b   : > { %v408_v52 = vpop.permute.xlu1 %407 }
 0x20c   : > { %438 = vst.msk [vmem:[%s2511_s20 + $0x2] sm:$0x1] %vm436_vm9, %v2520_v48  ;;  %v472_v19 = vrot.slane %v2520_v48, 7  ;;  %v2527_v20 = vadd.f32 %v2455_v62, %v408_v52 }
 0x20e   : > { %439 = vst.msk [vmem:[%s2511_s20 + $0x4] sm:$0x1] %vm436_vm9, %v2527_v20  ;;  %v474_v60 = vrot.slane %v2527_v20, 6  ;;  %v473_v61 = vsel %vm333_vm2, %v472_v19, %v2514_v39 }
 0x20f   : > { %v410_v22 = vpop.permute.xlu1 %409  ;;  %v412_v24 = vpop.permute.xlu0 %411 }
 0x210   : > { %v2536_v27 = vadd.f32 %v2458_v0, %v410_v22  ;;  %v2539_v28 = vadd.f32 %v2461_v18, %v412_v24  ;;  %v475_v31 = vsel %vm336_vm3, %v474_v60, %v473_v61 }
 0x212   : > { %440 = vst.msk [vmem:[%s2511_s20 + $0x6] sm:$0x1] %vm436_vm9, %v2536_v27  ;;  %v476_v62 = vrot.slane %v2536_v27, 5  ;;  %441 = vst.msk [vmem:[%s2511_s20 + $0x8] sm:$0x1] %vm436_vm9, %v2539_v28  ;;  %v478_v32 = vrot.slane %v2539_v28, 4 }
 0x213   : > { %v414_v33 = vpop.permute.xlu1 %413  ;;  %v416_v35 = vpop.permute.xlu0 %415 }
 0x214   : > { %v477_v0 = vsel %vm339_vm4, %v476_v62, %v475_v31  ;;  %v2552_v18 = vadd.f32 %v2466_v21, %v414_v33  ;;  %v2555_v36 = vadd.f32 %v2470_v25, %v416_v35 }
 0x215   : > { %v479_v38 = vsel %vm342_vm5, %v478_v32, %v477_v0 }
 0x216   : > { %442 = vst.msk [vmem:[%s2511_s20 + $0xa] sm:$0x1] %vm436_vm9, %v2552_v18  ;;  %v480_v37 = vrot.slane %v2552_v18, 3  ;;  %443 = vst.msk [vmem:[%s2511_s20 + $0xc] sm:$0x1] %vm436_vm9, %v2555_v36  ;;  %v482_v40 = vrot.slane %v2555_v36, 2 }
 0x217   : > { %v418_v41 = vpop.permute.xlu1 %417 }
 0x218   : > { %v2567_v42 = vadd.f32 %v2474_v29, %v418_v41  ;;  %v481_v21 = vsel %vm345_vm6, %v480_v37, %v479_v38  ;;  %v1766_v29 = vld [vmem:[%s2401_s12 + $0x1] sm:$0x1] }
 0x219   : > { %v483_v43 = vsel %vm348_vm7, %v482_v40, %v481_v21 }
 0x21a   : > { %444 = vst.msk [vmem:[%s2511_s20 + $0xe] sm:$0x1] %vm436_vm9, %v2567_v42  ;;  %v484_v25 = vrot.slane %v2567_v42, 1 }
 0x21c   : > { %v485_v45 = vsel %vm351_vm8, %v484_v25, %v483_v43 }
 0x21d   : > { %1920 = vmatmul.mubr.msk.f32.vlgmr.msra.gmra.mrb[2].mxu0 %vm24_vm0, %v485_v45  ;;  %1931 = vmatmul.mubr.msk.f32.vlgmr.msra.gmra.mrb[2].mxu1 %vm24_vm0, %v485_v45 }
 0x21e   : > { %2003 = vmatpush3.bf16.msra.mxu0 %v2351_v11  ;;  %2009 = vmatpush3.bf16.msra.mxu1 %v2357_v13 }
 0x21f   : > { %2004 = vmatprep.subr.bf16.mxu0 %v2257_v12  ;;  %2010 = vmatprep.subr.bf16.mxu1 %v2257_v12 }
 0x220   : > { %1941 = vmatprep.mubr.msk.f32.mxu0 %vm2258_vm1, %v2259_v15  ;;  %1952 = vmatprep.mubr.msk.f32.mxu1 %vm2258_vm1, %v2259_v15 }
 0x222   : > { %2006 = vmatpush3.bf16.msra.mxu0 %v2362_v14  ;;  %2012 = vmatpush3.bf16.msra.mxu1 %v2370_v16 }
 0x223   : > { %2013 = vmatprep.subr.bf16.mxu0 %v2257_v12  ;;  %2019 = vmatprep.subr.bf16.mxu1 %v2257_v12 }
 0x2f0   : > { %v554_v53 = vpop.f32.mrb[2].mxu0  ;;  %v624_v54 = vpop.f32.mrb[2].mxu1 }
 0x2f1   : > { %v629_v55 = vrot.slane %v554_v53, 1  ;;  %v630_v56 = vrot.slane %v554_v53, 2  ;;  %v631_v57 = vrot.slane %v554_v53, 3  ;;  %v632_v58 = vrot.slane %v554_v53, 4  ;;  %v1921_v23 = vpop.f32.mrb[3].mxu0  ;;  %v1932_v59 = vpop.f32.mrb[3].mxu1 }
 0x2f2   : > { %v633_v30 = vrot.slane %v554_v53, 5  ;;  %v634_v63 = vrot.slane %v554_v53, 6  ;;  %v635_v17 = vrot.slane %v554_v53, 7  ;;  %v644_v34 = vadd.f32 %v1766_v29, %v554_v53  ;;  %v1775_v23 = vld [vmem:[%s2417_s15 + $0x1] sm:$0x1] }
 0x2f3   : > { %v645_v44 = vadd.f32 %v1767_v46, %v629_v55  ;;  %v646_v52 = vadd.f32 %v1768_v10, %v630_v56  ;;  %v647_v19 = vadd.f32 %v1769_v47, %v631_v57  ;;  %v648_v60 = vadd.f32 %v1770_v49, %v632_v58 }
 0x2f4   : > { %v649_v22 = vadd.f32 %v1771_v50, %v633_v30  ;;  %v650_v24 = vadd.f32 %v1772_v51, %v634_v63  ;;  %v1785_v61 = vmul.f32 -1.442695, %v644_v34  ;;  %v651_v62 = vadd.f32 %v1773_v26, %v635_v17  ;;  %v1776_v17 = vld [vmem:[%s2417_s15 + $0x9] sm:$0x1] }
 0x2f5   : > { %v1786_v31 = vmul.f32 -1.442695, %v645_v44  ;;  %v1787_v32 = vmul.f32 -1.442695, %v646_v52  ;;  %v1788_v33 = vmul.f32 -1.442695, %v647_v19  ;;  %v625_v57 = vadd.f32 %v2337_v9, %v624_v54 }
 0x2f6   : > { %2096 = vpow2.f32 %v1785_v61  ;;  %v1789_v35 = vmul.f32 -1.442695, %v648_v60  ;;  %v1790_v0 = vmul.f32 -1.442695, %v649_v22  ;;  %v1791_v37 = vmul.f32 -1.442695, %v650_v24 }
 0x2f7   : > { %2098 = vpow2.f32 %v1786_v31  ;;  %v1792_v38 = vmul.f32 -1.442695, %v651_v62  ;;  %v701_v59 = vrot.slane %v625_v57, 1  ;;  %v702_v63 = vrot.slane %v625_v57, 2  ;;  %v1777_v44 = vld [vmem:[%s2417_s15 + $0x11] sm:$0x1] }
 0x2f8   : > { %2100 = vpow2.f32 %v1787_v32  ;;  %v703_v19 = vrot.slane %v625_v57, 3  ;;  %v1778_v24 = vld [vmem:[%s2417_s15 + $0x19] sm:$0x1]  ;;  %v704_v61 = vrot.slane %v625_v57, 4 }
 0x2f9   : > { %2102 = vpow2.f32 %v1788_v33  ;;  %v1779_v33 = vld [vmem:[%s2417_s15 + $0x21] sm:$0x1] }
 0x2fa   : > { %2104 = vpow2.f32 %v1789_v35  ;;  %v705_v35 = vrot.slane %v625_v57, 5 }
 0x2fb   : > { %2106 = vpow2.f32 %v1790_v0 }
 0x2fc   : > { %2108 = vpow2.f32 %v1791_v37 }
 0x2fd   : > { %2110 = vpow2.f32 %v1792_v38 }
 0x300   : > { %v2097_v40 = vpop.eup %2096 }
 0x301   : > { %v2099_v41 = vpop.eup %2098  ;;  %v676_v21 = vadd.f32 1.0, %v2097_v40  ;;  %v706_v40 = vrot.slane %v625_v57, 6 }
 0x302   : > { %v2101_v25 = vpop.eup %2100  ;;  %v677_v43 = vadd.f32 1.0, %v2099_v41 }
 0x303   : > { %v2103_v45 = vpop.eup %2102  ;;  %v678_v29 = vadd.f32 1.0, %v2101_v25  ;;  %2112 = vrcp.f32 %v676_v21  ;;  %v1780_v25 = vld [vmem:[%s2417_s15 + $0x29] sm:$0x1] }
 0x304   : > { %v2105_v46 = vpop.eup %2104  ;;  %v679_v10 = vadd.f32 1.0, %v2103_v45  ;;  %2114 = vrcp.f32 %v677_v43 }
 0x305   : > { %v2107_v47 = vpop.eup %2106  ;;  %v680_v49 = vadd.f32 1.0, %v2105_v46  ;;  %2116 = vrcp.f32 %v678_v29 }
 0x306   : > { %v2109_v50 = vpop.eup %2108  ;;  %v681_v51 = vadd.f32 1.0, %v2107_v47  ;;  %2118 = vrcp.f32 %v679_v10  ;;  %v707_v10 = vrot.slane %v625_v57, 7  ;;  %v1781_v47 = vld [vmem:[%s2417_s15 + $0x31] sm:$0x1] }
 0x307   : > { %v2111_v53 = vpop.eup %2110  ;;  %v682_v55 = vadd.f32 1.0, %v2109_v50  ;;  %2120 = vrcp.f32 %v680_v49 }
 0x308   : > { %v683_v56 = vadd.f32 1.0, %v2111_v53  ;;  %2122 = vrcp.f32 %v681_v51  ;;  %v1782_v51 = vld [vmem:[%s2417_s15 + $0x39] sm:$0x1] }
 0x309   : > { %2124 = vrcp.f32 %v682_v55 }
 0x30a   : > { %2126 = vrcp.f32 %v683_v56 }
 0x30d   : > { %v2599_v58 = vpop.eup %2112 }
 0x30e   : > { %v2602_v26 = vpop.eup %2114  ;;  %v716_v30 = vmul.f32 %v2599_v58, %v625_v57 }
 0x30f   : > { %v2606_v34 = vpop.eup %2116  ;;  %v717_v52 = vmul.f32 %v2602_v26, %v701_v59 }
 0x310   : > { %v2610_v54 = vpop.eup %2118  ;;  %v724_v60 = vadd.f32 %v1775_v23, %v716_v30  ;;  %v718_v22 = vmul.f32 %v2606_v34, %v702_v63 }
 0x311   : > { %v2614_v62 = vpop.eup %2120  ;;  %v725_v31 = vadd.f32 %v1776_v17, %v717_v52  ;;  %v719_v32 = vmul.f32 %v2610_v54, %v703_v19 }
 0x312   : > { %v2618_v0 = vpop.eup %2122  ;;  %2128 = vtanh.f32 %v724_v60  ;;  %v726_v37 = vadd.f32 %v1777_v44, %v718_v22  ;;  %v720_v38 = vmul.f32 %v2614_v62, %v704_v61 }
 0x313   : > { %v2621_v41 = vpop.eup %2124  ;;  %2130 = vtanh.f32 %v725_v31  ;;  %v727_v21 = vadd.f32 %v1778_v24, %v719_v32  ;;  %v721_v43 = vmul.f32 %v2618_v0, %v705_v35 }
 0x314   : > { %v2127_v45 = vpop.eup %2126  ;;  %2132 = vtanh.f32 %v726_v37  ;;  %v728_v29 = vadd.f32 %v1779_v33, %v720_v38  ;;  %v722_v46 = vmul.f32 %v2621_v41, %v706_v40 }
 0x315   : > { %2134 = vtanh.f32 %v727_v21  ;;  %v729_v49 = vadd.f32 %v1780_v25, %v721_v43  ;;  %v723_v50 = vmul.f32 %v2127_v45, %v707_v10 }
 0x316   : > { %2136 = vtanh.f32 %v728_v29  ;;  %v730_v53 = vadd.f32 %v1781_v47, %v722_v46 }
 0x317   : > { %2138 = vtanh.f32 %v729_v49  ;;  %v731_v55 = vadd.f32 %v1782_v51, %v723_v50 }
 0x318   : > { %2140 = vtanh.f32 %v730_v53 }
 0x319   : > { %2142 = vtanh.f32 %v731_v55 }
 0x31c   : > { %v2129_v56 = vpop.eup %2128 }
 0x31d   : > { %v2131_v23 = vpop.eup %2130  ;;  %v740_v59 = vsub.f32 %v2514_v39, %v2129_v56 }
 0x31e   : > { %v2133_v30 = vpop.eup %2132  ;;  %v741_v17 = vsub.f32 %v2520_v48, %v2131_v23 }
 0x31f   : > { %756 = vrot.lane.b32.xlu0 %v740_v59, %s2260_s16  ;;  %v742_v57 = vsub.f32 %v2527_v20, %v2133_v30  ;;  %v2135_v63 = vpop.eup %2134 }
 0x320   : > { %v2137_v44 = vpop.eup %2136  ;;  %v743_v52 = vsub.f32 %v2536_v27, %v2135_v63 }
 0x321   : > { %760 = vrot.lane.b32.xlu1 %v742_v57, %s2260_s16  ;;  %v2139_v19 = vpop.eup %2138  ;;  %v744_v39 = vsub.f32 %v2539_v28, %v2137_v44 }
 0x322   : > { %v2141_v60 = vpop.eup %2140  ;;  %v745_v20 = vsub.f32 %v2552_v18, %v2139_v19 }
 0x323   : > { %758 = vrot.lane.b32.xlu0 %v741_v17, %s2260_s16  ;;  %v2143_v22 = vpop.eup %2142  ;;  %v746_v48 = vsub.f32 %v2555_v36, %v2141_v60 }
 0x324   : > { %v747_v24 = vsub.f32 %v2567_v42, %v2143_v22 }
 0x325   : > { %762 = vrot.lane.b32.xlu1 %v743_v52, %s2260_s16 }
 0x327   : > { %764 = vrot.lane.b32.xlu0 %v744_v39, %s2260_s16 }
 0x329   : > { %766 = vrot.lane.b32.xlu1 %v745_v20, %s2260_s16 }
 0x32b   : > { %768 = vrot.lane.b32.xlu0 %v746_v48, %s2260_s16 }
 0x32d   : > { %770 = vrot.lane.b32.xlu1 %v747_v24, %s2260_s16  ;;  %v1797_v24 = vld [vmem:[%s2401_s12 + $0x1a] sm:$0x1] }
 0x391   : > { %v757_v27 = vpop.permute.xlu0 %756 }
 0x392   : > { %v780_v61 = vmul.f32 %v2599_v58, %v757_v27  ;;  %v1799_v27 = vld [vmem:[%s2401_s12 + $0x2a] sm:$0x1] }
 0x393   : > { %v761_v28 = vpop.permute.xlu1 %760 }
 0x394   : > { %v782_v31 = vmul.f32 %v2606_v34, %v761_v28  ;;  %796 = vrot.lane.b32.xlu0 %v780_v61, %s2261_s17  ;;  %v1800_v61 = vld [vmem:[%s2401_s12 + $0x32] sm:$0x1] }
 0x395   : > { %v759_v18 = vpop.permute.xlu0 %758 }
 0x396   : > { %v781_v32 = vmul.f32 %v2602_v26, %v759_v18  ;;  %800 = vrot.lane.b32.xlu1 %v782_v31, %s2261_s17 }
 0x397   : > { %v763_v36 = vpop.permute.xlu1 %762 }
 0x398   : > { %v783_v33 = vmul.f32 %v2610_v54, %v763_v36  ;;  %798 = vrot.lane.b32.xlu0 %v781_v32, %s2261_s17 }
 0x399   : > { %v765_v42 = vpop.permute.xlu0 %764 }
 0x39a   : > { %v784_v35 = vmul.f32 %v2614_v62, %v765_v42  ;;  %802 = vrot.lane.b32.xlu1 %v783_v33, %s2261_s17  ;;  %v1801_v42 = vld [vmem:[%s2401_s12 + $0x3a] sm:$0x1] }
 0x39b   : > { %v767_v58 = vpop.permute.xlu1 %766 }
 0x39c   : > { %v785_v34 = vmul.f32 %v2618_v0, %v767_v58  ;;  %804 = vrot.lane.b32.xlu0 %v784_v35, %s2261_s17 }
 0x39d   : > { %v769_v37 = vpop.permute.xlu0 %768 }
 0x39e   : > { %v786_v26 = vmul.f32 %v2621_v41, %v769_v37  ;;  %806 = vrot.lane.b32.xlu1 %v785_v34, %s2261_s17 }
 0x39f   : > { %v771_v38 = vpop.permute.xlu1 %770 }
 0x3a0   : > { %v787_v40 = vmul.f32 %v2127_v45, %v771_v38  ;;  %808 = vrot.lane.b32.xlu0 %v786_v26, %s2261_s17 }
 0x3a2   : > { %810 = vrot.lane.b32.xlu1 %v787_v40, %s2261_s17 }
 0x406   : > { %v797_v54 = vpop.permute.xlu0 %796 }
 0x407   : > { %v2663_v29 = vadd.f32 %v2129_v56, %v797_v54 }
 0x408   : > { %v801_v62 = vpop.permute.xlu1 %800 }
 0x409   : > { %v2659_v21 = vadd.f32 %v2133_v30, %v801_v62 }
 0x40a   : > { %v799_v25 = vpop.permute.xlu0 %798 }
 0x40b   : > { %v2661_v43 = vadd.f32 %v2131_v23, %v799_v25  ;;  %v890_v45 = vrot.slane %v2659_v21, 6 }
 0x40c   : > { %v803_v0 = vpop.permute.xlu1 %802 }
 0x40d   : > { %v888_v41 = vrot.slane %v2661_v43, 7  ;;  %v2666_v46 = vadd.f32 %v2135_v63, %v803_v0 }
 0x40e   : > { %v805_v10 = vpop.permute.xlu0 %804 }
 0x40f   : > { %v889_v47 = vsel %vm333_vm2, %v888_v41, %v2663_v29  ;;  %v892_v49 = vrot.slane %v2666_v46, 5  ;;  %v2672_v50 = vadd.f32 %v2137_v44, %v805_v10 }
 0x410   : > { %v891_v51 = vsel %vm336_vm3, %v890_v45, %v889_v47  ;;  %v807_v53 = vpop.permute.xlu1 %806 }
 0x411   : > { %v893_v55 = vsel %vm339_vm4, %v892_v49, %v891_v51  ;;  %v894_v56 = vrot.slane %v2672_v50, 4  ;;  %v2677_v23 = vadd.f32 %v2139_v19, %v807_v53 }
 0x412   : > { %v809_v59 = vpop.permute.xlu0 %808 }
 0x413   : > { %v895_v30 = vsel %vm342_vm5, %v894_v56, %v893_v55  ;;  %v896_v57 = vrot.slane %v2677_v23, 3  ;;  %v2681_v63 = vadd.f32 %v2141_v60, %v809_v59  ;;  %v1794_v60 = vld [vmem:[%s2401_s12 + $0x2] sm:$0x1] }
 0x414   : > { %v811_v17 = vpop.permute.xlu1 %810 }
 0x415   : > { %v898_v44 = vrot.slane %v2681_v63, 2  ;;  %v2684_v52 = vadd.f32 %v2143_v22, %v811_v17  ;;  %v897_v39 = vsel %vm345_vm6, %v896_v57, %v895_v30  ;;  %v1795_v22 = vld [vmem:[%s2401_s12 + $0xa] sm:$0x1] }
 0x417   : > { %v900_v19 = vrot.slane %v2684_v52, 1  ;;  %v899_v20 = vsel %vm348_vm7, %v898_v44, %v897_v39 }
 0x419   : > { %v901_v48 = vsel %vm351_vm8, %v900_v19, %v899_v20 }
 0x41a   : > { %1942 = vmatmul.mubr.msk.f32.vlgmr.msra.gmra.mrb[4].mxu0 %vm24_vm0, %v901_v48  ;;  %1953 = vmatmul.mubr.msk.f32.vlgmr.msra.gmra.mrb[4].mxu1 %vm24_vm0, %v901_v48 }
 0x41b   : > { %2015 = vmatpush3.bf16.msra.mxu0 %v2351_v11  ;;  %2021 = vmatpush3.bf16.msra.mxu1 %v2357_v13  ;;  %v1796_v11 = vld [vmem:[%s2401_s12 + $0x12] sm:$0x1]  ;;  %v1798_v13 = vld [vmem:[%s2401_s12 + $0x22] sm:$0x1] }
 0x41c   : > { %2016 = vmatprep.subr.bf16.mxu0 %v2257_v12  ;;  %2022 = vmatprep.subr.bf16.mxu1 %v2257_v12 }
 0x41d   : > { %1963 = vmatprep.mubr.msk.f32.mxu0 %vm2258_vm1, %v2259_v15  ;;  %1974 = vmatprep.mubr.msk.f32.mxu1 %vm2258_vm1, %v2259_v15 }
 0x41f   : > { %2018 = vmatpush3.bf16.msra.mxu0 %v2362_v14  ;;  %2024 = vmatpush3.bf16.msra.mxu1 %v2370_v16 }
 0x4ed   : > { %v970_v28 = vpop.f32.mrb[4].mxu0  ;;  %v1040_v12 = vpop.f32.mrb[4].mxu1 }
 0x4ee   : > { %v1045_v31 = vrot.slane %v970_v28, 1  ;;  %v1046_v18 = vrot.slane %v970_v28, 2  ;;  %v1047_v32 = vrot.slane %v970_v28, 3  ;;  %v1048_v36 = vrot.slane %v970_v28, 4  ;;  %v1943_v33 = vpop.f32.mrb[5].mxu0  ;;  %v1954_v15 = vpop.f32.mrb[5].mxu1 }
 0x4ef   : > { %v1049_v14 = vrot.slane %v970_v28, 5  ;;  %v1050_v35 = vrot.slane %v970_v28, 6  ;;  %v1051_v16 = vrot.slane %v970_v28, 7  ;;  %v1060_v58 = vadd.f32 %v1794_v60, %v970_v28  ;;  %v1805_v15 = vld [vmem:[%s2417_s15 + $0x12] sm:$0x1] }
 0x4f0   : > { %v1061_v34 = vadd.f32 %v1795_v22, %v1045_v31  ;;  %v1062_v37 = vadd.f32 %v1796_v11, %v1046_v18  ;;  %v1063_v26 = vadd.f32 %v1797_v24, %v1047_v32  ;;  %v1064_v38 = vadd.f32 %v1798_v13, %v1048_v36  ;;  %v1804_v36 = vld [vmem:[%s2417_s15 + $0xa] sm:$0x1] }
 0x4f1   : > { %v1065_v40 = vadd.f32 %v1799_v27, %v1049_v14  ;;  %v1066_v54 = vadd.f32 %v1800_v61, %v1050_v35  ;;  %v1813_v62 = vmul.f32 -1.442695, %v1060_v58  ;;  %v1067_v25 = vadd.f32 %v1801_v42, %v1051_v16  ;;  %v1803_v61 = vld [vmem:[%s2417_s15 + $0x2] sm:$0x1]  ;;  %v1806_v58 = vld [vmem:[%s2417_s15 + $0x1a] sm:$0x1] }
 0x4f2   : > { %v1814_v0 = vmul.f32 -1.442695, %v1061_v34  ;;  %v1815_v41 = vmul.f32 -1.442695, %v1062_v37  ;;  %v1816_v45 = vmul.f32 -1.442695, %v1063_v26  ;;  %v1041_v13 = vadd.f32 %v2337_v9, %v1040_v12 }
 0x4f3   : > { %2144 = vpow2.f32 %v1813_v62  ;;  %v1817_v10 = vmul.f32 -1.442695, %v1064_v38  ;;  %v1818_v47 = vmul.f32 -1.442695, %v1065_v40  ;;  %v1819_v49 = vmul.f32 -1.442695, %v1066_v54 }
 0x4f4   : > { %2146 = vpow2.f32 %v1814_v0  ;;  %v1820_v51 = vmul.f32 -1.442695, %v1067_v25  ;;  %v1117_v28 = vrot.slane %v1041_v13, 1  ;;  %v1118_v32 = vrot.slane %v1041_v13, 2  ;;  %v1807_v40 = vld [vmem:[%s2417_s15 + $0x22] sm:$0x1] }
 0x4f5   : > { %2148 = vpow2.f32 %v1815_v41  ;;  %v1119_v14 = vrot.slane %v1041_v13, 3  ;;  %v1120_v34 = vrot.slane %v1041_v13, 4  ;;  %v1121_v54 = vrot.slane %v1041_v13, 5 }
 0x4f6   : > { %2150 = vpow2.f32 %v1816_v45  ;;  %v1122_v41 = vrot.slane %v1041_v13, 6 }
 0x4f7   : > { %2152 = vpow2.f32 %v1817_v10 }
 0x4f8   : > { %2154 = vpow2.f32 %v1818_v47  ;;  %v1808_v47 = vld [vmem:[%s2417_s15 + $0x2a] sm:$0x1] }
 0x4f9   : > { %2156 = vpow2.f32 %v1819_v49 }
 0x4fa   : > { %2158 = vpow2.f32 %v1820_v51 }
 0x4fd   : > { %v2145_v53 = vpop.eup %2144 }
 0x4fe   : > { %v2147_v55 = vpop.eup %2146  ;;  %v1092_v56 = vadd.f32 1.0, %v2145_v53 }
 0x4ff   : > { %v2149_v59 = vpop.eup %2148  ;;  %v1093_v30 = vadd.f32 1.0, %v2147_v55 }
 0x500   : > { %v2151_v57 = vpop.eup %2150  ;;  %v1094_v17 = vadd.f32 1.0, %v2149_v59  ;;  %2160 = vrcp.f32 %v1092_v56  ;;  %v1123_v56 = vrot.slane %v1041_v13, 7  ;;  %v1809_v59 = vld [vmem:[%s2417_s15 + $0x32] sm:$0x1] }
 0x501   : > { %v2153_v44 = vpop.eup %2152  ;;  %v1095_v39 = vadd.f32 1.0, %v2151_v57  ;;  %2162 = vrcp.f32 %v1093_v30 }
 0x502   : > { %v2155_v19 = vpop.eup %2154  ;;  %v1096_v20 = vadd.f32 1.0, %v2153_v44  ;;  %2164 = vrcp.f32 %v1094_v17  ;;  %v1810_v17 = vld [vmem:[%s2417_s15 + $0x3a] sm:$0x1] }
 0x503   : > { %v2157_v48 = vpop.eup %2156  ;;  %v1097_v60 = vadd.f32 1.0, %v2155_v19  ;;  %2166 = vrcp.f32 %v1095_v39 }
 0x504   : > { %v2159_v22 = vpop.eup %2158  ;;  %v1098_v11 = vadd.f32 1.0, %v2157_v48  ;;  %2168 = vrcp.f32 %v1096_v20 }
 0x505   : > { %v1099_v24 = vadd.f32 1.0, %v2159_v22  ;;  %2170 = vrcp.f32 %v1097_v60 }
 0x506   : > { %2172 = vrcp.f32 %v1098_v11 }
 0x507   : > { %2174 = vrcp.f32 %v1099_v24 }
 0x50a   : > { %v2711_v27 = vpop.eup %2160 }
 0x50b   : > { %v2714_v31 = vpop.eup %2162  ;;  %v1132_v18 = vmul.f32 %v2711_v27, %v1041_v13 }
 0x50c   : > { %v2718_v33 = vpop.eup %2164  ;;  %v1133_v42 = vmul.f32 %v2714_v31, %v1117_v28 }
 0x50d   : > { %v2722_v12 = vpop.eup %2166  ;;  %v1140_v35 = vadd.f32 %v1803_v61, %v1132_v18  ;;  %v1134_v16 = vmul.f32 %v2718_v33, %v1118_v32 }
 0x50e   : > { %v2726_v37 = vpop.eup %2168  ;;  %v1141_v26 = vadd.f32 %v1804_v36, %v1133_v42  ;;  %v1135_v38 = vmul.f32 %v2722_v12, %v1119_v14 }
 0x50f   : > { %v2730_v62 = vpop.eup %2170  ;;  %2176 = vtanh.f32 %v1140_v35  ;;  %v1142_v25 = vadd.f32 %v1805_v15, %v1134_v16  ;;  %v1136_v0 = vmul.f32 %v2726_v37, %v1120_v34 }
 0x510   : > { %v2733_v45 = vpop.eup %2172  ;;  %2178 = vtanh.f32 %v1141_v26  ;;  %v1143_v10 = vadd.f32 %v1806_v58, %v1135_v38  ;;  %v1137_v49 = vmul.f32 %v2730_v62, %v1121_v54 }
 0x511   : > { %v2175_v51 = vpop.eup %2174  ;;  %2180 = vtanh.f32 %v1142_v25  ;;  %v1144_v53 = vadd.f32 %v1807_v40, %v1136_v0  ;;  %v1138_v55 = vmul.f32 %v2733_v45, %v1122_v41 }
 0x512   : > { %2182 = vtanh.f32 %v1143_v10  ;;  %v1145_v30 = vadd.f32 %v1808_v47, %v1137_v49  ;;  %v1139_v57 = vmul.f32 %v2175_v51, %v1123_v56 }
 0x513   : > { %2184 = vtanh.f32 %v1144_v53  ;;  %v1146_v44 = vadd.f32 %v1809_v59, %v1138_v55 }
 0x514   : > { %2186 = vtanh.f32 %v1145_v30  ;;  %v1147_v39 = vadd.f32 %v1810_v17, %v1139_v57 }
 0x515   : > { %2188 = vtanh.f32 %v1146_v44 }
 0x516   : > { %2190 = vtanh.f32 %v1147_v39 }
 0x519   : > { %v2177_v19 = vpop.eup %2176 }
 0x51a   : > { %v2179_v20 = vpop.eup %2178  ;;  %v1156_v48 = vsub.f32 %v2663_v29, %v2177_v19 }
 0x51b   : > { %v2181_v60 = vpop.eup %2180  ;;  %v1157_v24 = vsub.f32 %v2661_v43, %v2179_v20 }
 0x51c   : > { %1172 = vrot.lane.b32.xlu0 %v1156_v48, %s2260_s16  ;;  %v1158_v22 = vsub.f32 %v2659_v21, %v2181_v60  ;;  %v2183_v11 = vpop.eup %2182 }
 0x51d   : > { %v2185_v13 = vpop.eup %2184  ;;  %v1159_v61 = vsub.f32 %v2666_v46, %v2183_v11 }
 0x51e   : > { %1176 = vrot.lane.b32.xlu1 %v1158_v22, %s2260_s16  ;;  %v2187_v28 = vpop.eup %2186  ;;  %v1160_v18 = vsub.f32 %v2672_v50, %v2185_v13 }
 0x51f   : > { %v2189_v32 = vpop.eup %2188  ;;  %v1161_v36 = vsub.f32 %v2677_v23, %v2187_v28 }
 0x520   : > { %1174 = vrot.lane.b32.xlu0 %v1157_v24, %s2260_s16  ;;  %v2191_v15 = vpop.eup %2190  ;;  %v1162_v42 = vsub.f32 %v2681_v63, %v2189_v32 }
 0x521   : > { %v1163_v14 = vsub.f32 %v2684_v52, %v2191_v15 }
 0x522   : > { %1178 = vrot.lane.b32.xlu1 %v1159_v61, %s2260_s16 }
 0x524   : > { %1180 = vrot.lane.b32.xlu0 %v1160_v18, %s2260_s16 }
 0x526   : > { %1182 = vrot.lane.b32.xlu1 %v1161_v36, %s2260_s16 }
 0x528   : > { %1184 = vrot.lane.b32.xlu0 %v1162_v42, %s2260_s16 }
 0x52a   : > { %1186 = vrot.lane.b32.xlu1 %v1163_v14, %s2260_s16 }
 0x58e   : > { %v1173_v35 = vpop.permute.xlu0 %1172 }
 0x58f   : > { %v1196_v16 = vmul.f32 %v2711_v27, %v1173_v35 }
 0x590   : > { %v1177_v58 = vpop.permute.xlu1 %1176 }
 0x591   : > { %v1198_v34 = vmul.f32 %v2718_v33, %v1177_v58  ;;  %1212 = vrot.lane.b32.xlu0 %v1196_v16, %s2261_s17  ;;  %v1823_v16 = vld [vmem:[%s2401_s12 + $0xb] sm:$0x1]  ;;  %v1824_v58 = vld [vmem:[%s2401_s12 + $0x13] sm:$0x1] }
 0x592   : > { %v1175_v26 = vpop.permute.xlu0 %1174 }
 0x593   : > { %v1197_v38 = vmul.f32 %v2714_v31, %v1175_v26  ;;  %1216 = vrot.lane.b32.xlu1 %v1198_v34, %s2261_s17  ;;  %v1825_v34 = vld [vmem:[%s2401_s12 + $0x1b] sm:$0x1]  ;;  %v1826_v26 = vld [vmem:[%s2401_s12 + $0x23] sm:$0x1] }
 0x594   : > { %v1179_v40 = vpop.permute.xlu1 %1178 }
 0x595   : > { %v1199_v54 = vmul.f32 %v2722_v12, %v1179_v40  ;;  %1214 = vrot.lane.b32.xlu0 %v1197_v38, %s2261_s17  ;;  %v1828_v38 = vld [vmem:[%s2401_s12 + $0x33] sm:$0x1] }
 0x596   : > { %v1181_v25 = vpop.permute.xlu0 %1180 }
 0x597   : > { %v1200_v0 = vmul.f32 %v2726_v37, %v1181_v25  ;;  %1218 = vrot.lane.b32.xlu1 %v1199_v54, %s2261_s17 }
 0x598   : > { %v1183_v27 = vpop.permute.xlu1 %1182 }
 0x599   : > { %v1201_v33 = vmul.f32 %v2730_v62, %v1183_v27  ;;  %1220 = vrot.lane.b32.xlu0 %v1200_v0, %s2261_s17 }
 0x59a   : > { %v1185_v41 = vpop.permute.xlu0 %1184 }
 0x59b   : > { %v1202_v31 = vmul.f32 %v2733_v45, %v1185_v41  ;;  %1222 = vrot.lane.b32.xlu1 %v1201_v33, %s2261_s17 }
 0x59c   : > { %v1187_v10 = vpop.permute.xlu1 %1186 }
 0x59d   : > { %v1203_v47 = vmul.f32 %v2175_v51, %v1187_v10  ;;  %1224 = vrot.lane.b32.xlu0 %v1202_v31, %s2261_s17  ;;  %v1829_v10 = vld [vmem:[%s2401_s12 + $0x3b] sm:$0x1] }
 0x59f   : > { %1226 = vrot.lane.b32.xlu1 %v1203_v47, %s2261_s17 }
 0x603   : > { %v1213_v12 = vpop.permute.xlu0 %1212 }
 0x604   : > { %v2775_v56 = vadd.f32 %v2177_v19, %v1213_v12 }
 0x605   : > { %v1217_v37 = vpop.permute.xlu1 %1216 }
 0x606   : > { %v2771_v49 = vadd.f32 %v2181_v60, %v1217_v37 }
 0x607   : > { %v1215_v53 = vpop.permute.xlu0 %1214 }
 0x608   : > { %v2773_v55 = vadd.f32 %v2179_v20, %v1215_v53  ;;  %v1306_v51 = vrot.slane %v2771_v49, 6 }
 0x609   : > { %v1219_v62 = vpop.permute.xlu1 %1218 }
 0x60a   : > { %v1304_v45 = vrot.slane %v2773_v55, 7  ;;  %v2778_v59 = vadd.f32 %v2183_v11, %v1219_v62 }
 0x60b   : > { %v1221_v30 = vpop.permute.xlu0 %1220 }
 0x60c   : > { %v1305_v57 = vsel %vm333_vm2, %v1304_v45, %v2775_v56  ;;  %v1308_v17 = vrot.slane %v2778_v59, 5  ;;  %v2784_v44 = vadd.f32 %v2185_v13, %v1221_v30 }
 0x60d   : > { %v1307_v39 = vsel %vm336_vm3, %v1306_v51, %v1305_v57  ;;  %v1223_v20 = vpop.permute.xlu1 %1222 }
 0x60e   : > { %v1309_v19 = vsel %vm339_vm4, %v1308_v17, %v1307_v39  ;;  %v1310_v48 = vrot.slane %v2784_v44, 4  ;;  %v2789_v60 = vadd.f32 %v2187_v28, %v1223_v20 }
 0x60f   : > { %v1225_v22 = vpop.permute.xlu0 %1224 }
 0x610   : > { %v1311_v11 = vsel %vm342_vm5, %v1310_v48, %v1309_v19  ;;  %v1312_v24 = vrot.slane %v2789_v60, 3  ;;  %v2793_v13 = vadd.f32 %v2189_v32, %v1225_v22  ;;  %v1822_v32 = vld [vmem:[%s2401_s12 + $0x3] sm:$0x1] }
 0x611   : > { %v1227_v61 = vpop.permute.xlu1 %1226 }
 0x612   : > { %v1314_v18 = vrot.slane %v2793_v13, 2  ;;  %v2796_v36 = vadd.f32 %v2191_v15, %v1227_v61  ;;  %v1313_v28 = vsel %vm345_vm6, %v1312_v24, %v1311_v11  ;;  %v1827_v15 = vld [vmem:[%s2401_s12 + $0x2b] sm:$0x1] }
 0x614   : > { %v1316_v42 = vrot.slane %v2796_v36, 1  ;;  %v1315_v14 = vsel %vm348_vm7, %v1314_v18, %v1313_v28 }
 0x616   : > { %v1317_v35 = vsel %vm351_vm8, %v1316_v42, %v1315_v14 }
 0x617   : > { %1964 = vmatmul.mubr.msk.f32.vlgmr.msra.gmra.mrb[6].mxu0 %vm24_vm0, %v1317_v35  ;;  %1975 = vmatmul.mubr.msk.f32.vlgmr.msra.gmra.mrb[6].mxu1 %vm24_vm0, %v1317_v35 }
 0x6ea   : > { %v1386_v40 = vpop.f32.mrb[6].mxu0  ;;  %v1456_v54 = vpop.f32.mrb[6].mxu1 }
 0x6eb   : > { %v1461_v25 = vrot.slane %v1386_v40, 1  ;;  %v1462_v0 = vrot.slane %v1386_v40, 2  ;;  %v1463_v27 = vrot.slane %v1386_v40, 3  ;;  %v1464_v33 = vrot.slane %v1386_v40, 4  ;;  %v1965_v41 = vpop.f32.mrb[7].mxu0  ;;  %v1976_v31 = vpop.f32.mrb[7].mxu1 }
 0x6ec   : > { %v1465_v47 = vrot.slane %v1386_v40, 5  ;;  %v1466_v12 = vrot.slane %v1386_v40, 6  ;;  %v1467_v37 = vrot.slane %v1386_v40, 7  ;;  %v1476_v53 = vadd.f32 %v1822_v32, %v1386_v40 }
 0x6ed   : > { %v1477_v62 = vadd.f32 %v1823_v16, %v1461_v25  ;;  %v1478_v45 = vadd.f32 %v1824_v58, %v1462_v0  ;;  %v1479_v51 = vadd.f32 %v1825_v34, %v1463_v27  ;;  %v1480_v30 = vadd.f32 %v1826_v26, %v1464_v33 }
 0x6ee   : > { %v1481_v57 = vadd.f32 %v1827_v15, %v1465_v47  ;;  %v1482_v17 = vadd.f32 %v1828_v38, %v1466_v12  ;;  %v1841_v39 = vmul.f32 -1.442695, %v1476_v53  ;;  %v1483_v20 = vadd.f32 %v1829_v10, %v1467_v37  ;;  %v1831_v10 = vld [vmem:[%s2417_s15 + $0x3] sm:$0x1]  ;;  %v1832_v53 = vld [vmem:[%s2417_s15 + $0xb] sm:$0x1] }
 0x6ef   : > { %v1842_v19 = vmul.f32 -1.442695, %v1477_v62  ;;  %v1843_v48 = vmul.f32 -1.442695, %v1478_v45  ;;  %v1844_v22 = vmul.f32 -1.442695, %v1479_v51  ;;  %v1457_v41 = vadd.f32 %v2337_v9, %v1456_v54 }
 0x6f0   : > { %2192 = vpow2.f32 %v1841_v39  ;;  %v1845_v11 = vmul.f32 -1.442695, %v1480_v30  ;;  %v1846_v24 = vmul.f32 -1.442695, %v1481_v57  ;;  %v1847_v61 = vmul.f32 -1.442695, %v1482_v17 }
 0x6f1   : > { %2194 = vpow2.f32 %v1842_v19  ;;  %v1848_v18 = vmul.f32 -1.442695, %v1483_v20  ;;  %v1533_v47 = vrot.slane %v1457_v41, 1  ;;  %v1534_v62 = vrot.slane %v1457_v41, 2  ;;  %v1833_v30 = vld [vmem:[%s2417_s15 + $0x13] sm:$0x1] }
 0x6f2   : > { %2196 = vpow2.f32 %v1843_v48  ;;  %v1535_v54 = vrot.slane %v1457_v41, 3  ;;  %v1834_v20 = vld [vmem:[%s2417_s15 + $0x1b] sm:$0x1]  ;;  %v1536_v19 = vrot.slane %v1457_v41, 4 }
 0x6f3   : > { %2198 = vpow2.f32 %v1844_v22 }
 0x6f4   : > { %2200 = vpow2.f32 %v1845_v11 }
 0x6f5   : > { %2202 = vpow2.f32 %v1846_v24  ;;  %v1835_v24 = vld [vmem:[%s2417_s15 + $0x23] sm:$0x1] }
 0x6f6   : > { %2204 = vpow2.f32 %v1847_v61  ;;  %v1537_v61 = vrot.slane %v1457_v41, 5 }
 0x6f7   : > { %2206 = vpow2.f32 %v1848_v18 }
 0x6fa   : > { %v2193_v28 = vpop.eup %2192 }
 0x6fb   : > { %v2195_v42 = vpop.eup %2194  ;;  %v1508_v14 = vadd.f32 1.0, %v2193_v28 }
 0x6fc   : > { %v2197_v35 = vpop.eup %2196  ;;  %v1509_v32 = vadd.f32 1.0, %v2195_v42 }
 0x6fd   : > { %v2199_v16 = vpop.eup %2198  ;;  %v1510_v58 = vadd.f32 1.0, %v2197_v35  ;;  %2208 = vrcp.f32 %v1508_v14  ;;  %v1836_v14 = vld [vmem:[%s2417_s15 + $0x2b] sm:$0x1]  ;;  %v1538_v35 = vrot.slane %v1457_v41, 6 }
 0x6fe   : > { %v2201_v34 = vpop.eup %2200  ;;  %v1511_v26 = vadd.f32 1.0, %v2199_v16  ;;  %2210 = vrcp.f32 %v1509_v32 }
 0x6ff   : > { %v2203_v15 = vpop.eup %2202  ;;  %v1512_v38 = vadd.f32 1.0, %v2201_v34  ;;  %2212 = vrcp.f32 %v1510_v58  ;;  %v1539_v34 = vrot.slane %v1457_v41, 7 }
 0x700   : > { %v2205_v40 = vpop.eup %2204  ;;  %v1513_v25 = vadd.f32 1.0, %v2203_v15  ;;  %2214 = vrcp.f32 %v1511_v26 }
 0x701   : > { %v2207_v0 = vpop.eup %2206  ;;  %v1514_v27 = vadd.f32 1.0, %v2205_v40  ;;  %2216 = vrcp.f32 %v1512_v38 }
 0x702   : > { %v1515_v33 = vadd.f32 1.0, %v2207_v0  ;;  %2218 = vrcp.f32 %v1513_v25  ;;  %v1837_v25 = vld [vmem:[%s2417_s15 + $0x33] sm:$0x1] }
 0x703   : > { %2220 = vrcp.f32 %v1514_v27  ;;  %v1838_v27 = vld [vmem:[%s2417_s15 + $0x3b] sm:$0x1] }
 0x704   : > { %2222 = vrcp.f32 %v1515_v33 }
 0x707   : > { %v2813_v31 = vpop.eup %2208 }
 0x708   : > { %v2816_v12 = vpop.eup %2210  ;;  %v1548_v37 = vmul.f32 %v2813_v31, %v1457_v41 }
 0x709   : > { %v2820_v45 = vpop.eup %2212  ;;  %v1549_v51 = vmul.f32 %v2816_v12, %v1533_v47 }
 0x70a   : > { %v2824_v57 = vpop.eup %2214  ;;  %v1556_v17 = vadd.f32 %v1831_v10, %v1548_v37  ;;  %v1550_v39 = vmul.f32 %v2820_v45, %v1534_v62 }
 0x70b   : > { %v2828_v48 = vpop.eup %2216  ;;  %v1557_v22 = vadd.f32 %v1832_v53, %v1549_v51  ;;  %v1551_v11 = vmul.f32 %v2824_v57, %v1535_v54 }
 0x70c   : > { %v2832_v18 = vpop.eup %2218  ;;  %2224 = vtanh.f32 %v1556_v17  ;;  %v1558_v28 = vadd.f32 %v1833_v30, %v1550_v39  ;;  %v1552_v42 = vmul.f32 %v2828_v48, %v1536_v19 }
 0x70d   : > { %v2836_v32 = vpop.eup %2220  ;;  %2226 = vtanh.f32 %v1557_v22  ;;  %v1559_v16 = vadd.f32 %v1834_v20, %v1551_v11  ;;  %v1553_v58 = vmul.f32 %v2832_v18, %v1537_v61 }
 0x70e   : > { %v2223_v26 = vpop.eup %2222  ;;  %2228 = vtanh.f32 %v1558_v28  ;;  %v1560_v15 = vadd.f32 %v1835_v24, %v1552_v42  ;;  %v1554_v38 = vmul.f32 %v2836_v32, %v1538_v35 }
 0x70f   : > { %2230 = vtanh.f32 %v1559_v16  ;;  %v1561_v40 = vadd.f32 %v1836_v14, %v1553_v58  ;;  %v1555_v0 = vmul.f32 %v2223_v26, %v1539_v34 }
 0x710   : > { %2232 = vtanh.f32 %v1560_v15  ;;  %v1562_v33 = vadd.f32 %v1837_v25, %v1554_v38 }
 0x711   : > { %2234 = vtanh.f32 %v1561_v40  ;;  %v1563_v10 = vadd.f32 %v1838_v27, %v1555_v0 }
 0x712   : > { %2236 = vtanh.f32 %v1562_v33 }
 0x713   : > { %2238 = vtanh.f32 %v1563_v10 }
 0x716   : > { %v2842_v47 = vpop.eup %2224 }
 0x717   : > { %v2844_v37 = vpop.eup %2226  ;;  %v1572_v41 = vsub.f32 %v2775_v56, %v2842_v47 }
 0x718   : > { %v2848_v53 = vpop.eup %2228  ;;  %v1573_v62 = vsub.f32 %v2773_v55, %v2844_v37 }
 0x719   : > { %v2852_v51 = vpop.eup %2230  ;;  %1588 = vrot.lane.b32.xlu0 %v1572_v41, %s2260_s16  ;;  %v1574_v30 = vsub.f32 %v2771_v49, %v2848_v53 }
 0x71a   : > { %1590 = vrot.lane.b32.xlu1 %v1573_v62, %s2260_s16  ;;  %v2858_v54 = vpop.eup %2232  ;;  %v1575_v17 = vsub.f32 %v2778_v59, %v2852_v51 }
 0x71b   : > { %v2862_v39 = vpop.eup %2234  ;;  %v1576_v20 = vsub.f32 %v2784_v44, %v2858_v54 }
 0x71c   : > { %v2868_v19 = vpop.eup %2236  ;;  %v1577_v22 = vsub.f32 %v2789_v60, %v2862_v39 }
 0x71d   : > { %1592 = vrot.lane.b32.xlu0 %v1574_v30, %s2260_s16  ;;  %v2872_v11 = vpop.eup %2238  ;;  %v1578_v24 = vsub.f32 %v2793_v13, %v2868_v19 }
 0x71e   : > { %1594 = vrot.lane.b32.xlu1 %v1575_v17, %s2260_s16  ;;  %v1579_v61 = vsub.f32 %v2796_v36, %v2872_v11 }
 0x721   : > { %1596 = vrot.lane.b32.xlu0 %v1576_v20, %s2260_s16 }
 0x722   : > { %1598 = vrot.lane.b32.xlu1 %v1577_v22, %s2260_s16 }
 0x725   : > { %1600 = vrot.lane.b32.xlu0 %v1578_v24, %s2260_s16 }
 0x726   : > { %1602 = vrot.lane.b32.xlu1 %v1579_v61, %s2260_s16 }
 0x78b   : > { %v1589_v28 = vpop.permute.xlu0 %1588 }
 0x78c   : > { %v1612_v42 = vmul.f32 %v2813_v31, %v1589_v28  ;;  %v1591_v14 = vpop.permute.xlu1 %1590 }
 0x78d   : > { %v1613_v35 = vmul.f32 %v2816_v12, %v1591_v14 }
 0x78e   : > { %1628 = vrot.lane.b32.xlu0 %v1612_v42, %s2261_s17 }
 0x78f   : > { %v1593_v16 = vpop.permute.xlu0 %1592  ;;  %1630 = vrot.lane.b32.xlu1 %v1613_v35, %s2261_s17 }
 0x790   : > { %v1614_v58 = vmul.f32 %v2820_v45, %v1593_v16  ;;  %v1595_v34 = vpop.permute.xlu1 %1594 }
 0x791   : > { %v1615_v15 = vmul.f32 %v2824_v57, %v1595_v34 }
 0x792   : > { %1632 = vrot.lane.b32.xlu0 %v1614_v58, %s2261_s17 }
 0x793   : > { %v1597_v38 = vpop.permute.xlu0 %1596  ;;  %1634 = vrot.lane.b32.xlu1 %v1615_v15, %s2261_s17 }
 0x794   : > { %v1616_v31 = vmul.f32 %v2828_v48, %v1597_v38  ;;  %v1599_v40 = vpop.permute.xlu1 %1598 }
 0x795   : > { %v1617_v12 = vmul.f32 %v2832_v18, %v1599_v40 }
 0x796   : > { %1636 = vrot.lane.b32.xlu0 %v1616_v31, %s2261_s17 }
 0x797   : > { %v1601_v25 = vpop.permute.xlu0 %1600  ;;  %1638 = vrot.lane.b32.xlu1 %v1617_v12, %s2261_s17 }
 0x798   : > { %v1618_v45 = vmul.f32 %v2836_v32, %v1601_v25  ;;  %v1603_v0 = vpop.permute.xlu1 %1602 }
 0x799   : > { %v1619_v27 = vmul.f32 %v2223_v26, %v1603_v0 }
 0x79a   : > { %1640 = vrot.lane.b32.xlu0 %v1618_v45, %s2261_s17 }
 0x79b   : > { %1642 = vrot.lane.b32.xlu1 %v1619_v27, %s2261_s17 }
 0x79e   : > { %836 = vrot.lane.b32.xlu0 %v2663_v29, %s2260_s16 }
 0x79f   : > { %838 = vrot.lane.b32.xlu1 %v2661_v43, %s2260_s16 }
 0x7a2   : > { %840 = vrot.lane.b32.xlu0 %v2659_v21, %s2260_s16 }
 0x7a3   : > { %842 = vrot.lane.b32.xlu1 %v2666_v46, %s2260_s16 }
 0x7a6   : > { %844 = vrot.lane.b32.xlu0 %v2672_v50, %s2260_s16 }
 0x7a7   : > { %846 = vrot.lane.b32.xlu1 %v2677_v23, %s2260_s16 }
 0x7aa   : > { %848 = vrot.lane.b32.xlu0 %v2681_v63, %s2260_s16 }
 0x7ab   : > { %850 = vrot.lane.b32.xlu1 %v2684_v52, %s2260_s16 }
 0x7ae   : > { %1252 = vrot.lane.b32.xlu0 %v2775_v56, %s2262_s21 }
 0x7af   : > { %1254 = vrot.lane.b32.xlu1 %v2773_v55, %s2262_s21 }
 0x7b2   : > { %1256 = vrot.lane.b32.xlu0 %v2771_v49, %s2262_s21 }
 0x7b3   : > { %1258 = vrot.lane.b32.xlu1 %v2778_v59, %s2262_s21 }
 0x7b6   : > { %1260 = vrot.lane.b32.xlu0 %v2784_v44, %s2262_s21 }
 0x7b7   : > { %1262 = vrot.lane.b32.xlu1 %v2789_v60, %s2262_s21 }
 0x7ba   : > { %1264 = vrot.lane.b32.xlu0 %v2793_v13, %s2262_s21 }
 0x7bb   : > { %1266 = vrot.lane.b32.xlu1 %v2796_v36, %s2262_s21 }
 0x800   : > { %v1629_v21 = vpop.permute.xlu0 %1628 }
 0x801   : > { %v1652_v43 = vadd.f32 %v2842_v47, %v1629_v21  ;;  %v1631_v29 = vpop.permute.xlu1 %1630 }
 0x802   : > { %v1653_v46 = vadd.f32 %v2844_v37, %v1631_v29 }
 0x803   : > { %1668 = vrot.lane.b32.xlu0 %v1652_v43, %s2261_s17 }
 0x804   : > { %v1701_v50 = vrot.slane %v1653_v46, 7  ;;  %v1633_v23 = vpop.permute.xlu0 %1632  ;;  %1670 = vrot.lane.b32.xlu1 %v1653_v46, %s2261_s17 }
 0x805   : > { %v1654_v63 = vadd.f32 %v2848_v53, %v1633_v23  ;;  %v1635_v52 = vpop.permute.xlu1 %1634 }
 0x806   : > { %v1702_v49 = vsel %vm333_vm2, %v1701_v50, %v1652_v43  ;;  %v1655_v55 = vadd.f32 %v2852_v51, %v1635_v52 }
 0x807   : > { %v1703_v56 = vrot.slane %v1654_v63, 6  ;;  %1672 = vrot.lane.b32.xlu0 %v1654_v63, %s2261_s17 }
 0x808   : > { %v1705_v59 = vrot.slane %v1655_v55, 5  ;;  %v1637_v44 = vpop.permute.xlu0 %1636  ;;  %1674 = vrot.lane.b32.xlu1 %v1655_v55, %s2261_s17 }
 0x809   : > { %v1704_v60 = vsel %vm336_vm3, %v1703_v56, %v1702_v49  ;;  %v1656_v13 = vadd.f32 %v2858_v54, %v1637_v44  ;;  %v1639_v36 = vpop.permute.xlu1 %1638 }
 0x80a   : > { %v1706_v57 = vsel %vm339_vm4, %v1705_v59, %v1704_v60  ;;  %v1657_v48 = vadd.f32 %v2862_v39, %v1639_v36 }
 0x80b   : > { %v1707_v18 = vrot.slane %v1656_v13, 4  ;;  %1676 = vrot.lane.b32.xlu0 %v1656_v13, %s2261_s17 }
 0x80c   : > { %v1709_v32 = vrot.slane %v1657_v48, 3  ;;  %v1641_v26 = vpop.permute.xlu0 %1640  ;;  %1678 = vrot.lane.b32.xlu1 %v1657_v48, %s2261_s17 }
 0x80d   : > { %v1708_v33 = vsel %vm342_vm5, %v1707_v18, %v1706_v57  ;;  %v1658_v10 = vadd.f32 %v2868_v19, %v1641_v26  ;;  %v1643_v47 = vpop.permute.xlu1 %1642 }
 0x80e   : > { %v1710_v37 = vsel %vm345_vm6, %v1709_v32, %v1708_v33  ;;  %v1659_v41 = vadd.f32 %v2872_v11, %v1643_v47 }
 0x80f   : > { %v1711_v53 = vrot.slane %v1658_v10, 2  ;;  %1680 = vrot.lane.b32.xlu0 %v1658_v10, %s2261_s17 }
 0x810   : > { %v1713_v62 = vrot.slane %v1659_v41, 1  ;;  %v837_v51 = vpop.permute.xlu0 %836  ;;  %1682 = vrot.lane.b32.xlu1 %v1659_v41, %s2261_s17 }
 0x811   : > { %v1712_v30 = vsel %vm348_vm7, %v1711_v53, %v1710_v37  ;;  %861 = vst.msk [vmem:[%s2511_s20] sm:$0x1] %vm860_vm10, %v837_v51  ;;  %v839_v54 = vpop.permute.xlu1 %838 }
 0x812   : > { %v1714_v17 = vsel %vm351_vm8, %v1713_v62, %v1712_v30   ;;  %862 = vst.msk [vmem:[%s2511_s20 + $0x2] sm:$0x1] %vm860_vm10, %v839_v54 }
 0x813   : > { %v3004_v10 = vmov %v1714_v17  ;;  %1717 = vst.msk [vmem:[#allocation2] sm:$0xff] (%p44_p0), %vm24_vm0, %v1714_v17 }
 0x814   : > { %v841_v39 = vpop.permute.xlu0 %840 }
 0x815   : > { %863 = vst.msk [vmem:[%s2511_s20 + $0x4] sm:$0x1] %vm860_vm10, %v841_v39  ;;  %v843_v20 = vpop.permute.xlu1 %842 }
 0x816   : > { %864 = vst.msk [vmem:[%s2511_s20 + $0x6] sm:$0x1] %vm860_vm10, %v843_v20 }
 0x818   : > { %v845_v19 = vpop.permute.xlu0 %844 }
 0x819   : > { %865 = vst.msk [vmem:[%s2511_s20 + $0x8] sm:$0x1] %vm860_vm10, %v845_v19  ;;  %v847_v22 = vpop.permute.xlu1 %846 }
 0x81a   : > { %866 = vst.msk [vmem:[%s2511_s20 + $0xa] sm:$0x1] %vm860_vm10, %v847_v22 }
 0x81c   : > { %v849_v11 = vpop.permute.xlu0 %848 }
 0x81d   : > { %867 = vst.msk [vmem:[%s2511_s20 + $0xc] sm:$0x1] %vm860_vm10, %v849_v11  ;;  %v851_v24 = vpop.permute.xlu1 %850 }
 0x81e   : > { %868 = vst.msk [vmem:[%s2511_s20 + $0xe] sm:$0x1] %vm860_vm10, %v851_v24 }
 0x820   : > { %v1253_v61 = vpop.permute.xlu0 %1252 }
 0x821   : > { %1277 = vst.msk [vmem:[%s2511_s20] sm:$0x1] %vm1276_vm11, %v1253_v61  ;;  %v1255_v28 = vpop.permute.xlu1 %1254 }
 0x822   : > { %1278 = vst.msk [vmem:[%s2511_s20 + $0x2] sm:$0x1] %vm1276_vm11, %v1255_v28 }
 0x824   : > { %v1257_v42 = vpop.permute.xlu0 %1256 }
 0x825   : > { %1279 = vst.msk [vmem:[%s2511_s20 + $0x4] sm:$0x1] %vm1276_vm11, %v1257_v42  ;;  %v1259_v14 = vpop.permute.xlu1 %1258 }
 0x826   : > { %1280 = vst.msk [vmem:[%s2511_s20 + $0x6] sm:$0x1] %vm1276_vm11, %v1259_v14 }
 0x828   : > { %v1261_v35 = vpop.permute.xlu0 %1260 }
 0x829   : > { %1281 = vst.msk [vmem:[%s2511_s20 + $0x8] sm:$0x1] %vm1276_vm11, %v1261_v35  ;;  %v1263_v16 = vpop.permute.xlu1 %1262 }
 0x82a   : > { %1282 = vst.msk [vmem:[%s2511_s20 + $0xa] sm:$0x1] %vm1276_vm11, %v1263_v16 }
 0x82c   : > { %v1265_v58 = vpop.permute.xlu0 %1264 }
 0x82d   : > { %1283 = vst.msk [vmem:[%s2511_s20 + $0xc] sm:$0x1] %vm1276_vm11, %v1265_v58  ;;  %v1267_v34 = vpop.permute.xlu1 %1266 }
 0x82e   : > { %1284 = vst.msk [vmem:[%s2511_s20 + $0xe] sm:$0x1] %vm1276_vm11, %v1267_v34 }
 0x875   : > { %v1669_v15 = vpop.permute.xlu0 %1668 }
 0x876   : > { %1693 = vst.msk [vmem:[%s2511_s20] sm:$0x1] %vm1692_vm12, %v1669_v15  ;;  %v1671_v38 = vpop.permute.xlu1 %1670 }
 0x877   : > { %1694 = vst.msk [vmem:[%s2511_s20 + $0x2] sm:$0x1] %vm1692_vm12, %v1671_v38 }
 0x879   : > { %v1673_v31 = vpop.permute.xlu0 %1672 }
 0x87a   : > { %1695 = vst.msk [vmem:[%s2511_s20 + $0x4] sm:$0x1] %vm1692_vm12, %v1673_v31  ;;  %v1675_v40 = vpop.permute.xlu1 %1674 }
 0x87b   : > { %1696 = vst.msk [vmem:[%s2511_s20 + $0x6] sm:$0x1] %vm1692_vm12, %v1675_v40 }
 0x87d   : > { %v1677_v12 = vpop.permute.xlu0 %1676  ;;  %46 = sbr.rel (!%p44_p0) target bundleno = 9 (0x9), region = 60 }
 0x87e   : > { %1697 = vst.msk [vmem:[%s2511_s20 + $0x8] sm:$0x1] %vm1692_vm12, %v1677_v12  ;;  %v1679_v25 = vpop.permute.xlu1 %1678 }
 0x87f   : > { %1698 = vst.msk [vmem:[%s2511_s20 + $0xa] sm:$0x1] %vm1692_vm12, %v1679_v25 }
 0x881   : > { %v1681_v45 = vpop.permute.xlu0 %1680 }
 0x882   : > { %1699 = vst.msk [vmem:[%s2511_s20 + $0xc] sm:$0x1] %vm1692_vm12, %v1681_v45  ;;  %v1683_v0 = vpop.permute.xlu1 %1682 }
 0x883   : > { %1700 = vst.msk [vmem:[%s2511_s20 + $0xe] sm:$0x1] %vm1692_vm12, %v1683_v0 }

</bundles_post_ra>
